<compile_context>
chip_gen: v6e
topology: v6e:2x2x1
jax: 0.10.0
libtpu: 0.0.40
codegen_flags: <defaults>
</compile_context>

<pallas_src>
import jax
import jax.numpy as jnp
from jax import lax
from jax.experimental import pallas as pl
from jax.experimental.pallas import tpu as pltpu


def _round_up(x, m):
    return ((x + m - 1) // m) * m


def _pick_time_chunk(T, max_chunk=32):
    """Largest divisor of T that is <= max_chunk (always >= 1)."""
    tc = min(T, max_chunk)
    while T % tc:
        tc -= 1
    return tc


def _make_rnn_kernel(num_layers: int, time_chunk: int, b_pad: int, out_dim: int):
    """Kernel body for a fixed (static) number of RNN layers >= 2."""
    L, Tc, Bp = num_layers, time_chunk, b_pad

    def kernel(x_ref,      # (Tc*Bp, D)      flattened time-major chunk of x
               wih0_ref,   # (D, Hp)         layer-0 input->hidden weight (transposed)
               b0_ref,     # (1, Hp)         folded b_ih0 + b_hh0
               whh0_ref,   # (Hp, Hp)        layer-0 hidden->hidden weight
               wcat_ref,   # (L-1, 2Hp, Hp)  fused [W_ih_l ; W_hh_l] for layers 1..L-1
               bcat_ref,   # (L-1, 1, Hp)    folded b_ih_l + b_hh_l
               wfc_ref,    # (Hp, Op)        final Linear weight (transposed)
               bfc_ref,    # (1, Op)
               out_ref,    # (Bp, Op)        log-softmax output (resident across grid)
               h_ref):     # scratch VMEM (L, Bp, Hp) hidden state carried across chunks
        c = pl.program_id(0)

        # h0 = zeros (matches torch.zeros(layer_dim, B, H))
        @pl.when(c == 0)
        def _():
            h_ref[...] = jnp.zeros_like(h_ref)

        # Hoisted layer-0 input projection for the whole chunk: one MXU matmul
        # instead of Tc tiny ones inside the serial recurrence.
        xproj = jnp.dot(x_ref[...], wih0_ref[...],
                        preferred_element_type=jnp.float32) + b0_ref[...]

        # Hidden states live in vregs for the whole chunk.
        hs = [h_ref[l] for l in range(L)]

        for t in range(Tc):  # static unroll over the chunk
            xp_t = xproj[t * Bp:(t + 1) * Bp, :]            # 8-row aligned static slice
            hs[0] = jnp.tanh(
                xp_t + jnp.dot(hs[0].astype(whh0_ref.dtype), whh0_ref[...],
                               preferred_element_type=jnp.float32))
            inp = hs[0]
            for l in range(1, L):
                cat = jnp.concatenate([inp, hs[l]], axis=-1)   # (Bp, 2Hp), lane-aligned
                pre = jnp.dot(cat.astype(wcat_ref.dtype), wcat_ref[l - 1],
                              preferred_element_type=jnp.float32) + bcat_ref[l - 1]
                hs[l] = jnp.tanh(pre)
                inp = hs[l]

        # One VMEM write-back per layer per chunk (not per timestep).
        for l in range(L):
            h_ref[l] = hs[l]

        # Epilogue at the last chunk: fc(out[:, -1, :]) followed by log_softmax(dim=1).
        @pl.when(c == pl.num_programs(0) - 1)
        def _():
            logits = jnp.dot(hs[L - 1].astype(wfc_ref.dtype), wfc_ref[...],
                             preferred_element_type=jnp.float32) + bfc_ref[...]
            col = lax.broadcasted_iota(jnp.int32, logits.shape, 1)
            logits = jnp.where(col < out_dim, logits, -1e30)   # mask O padding
            m = jnp.max(logits, axis=1, keepdims=True)
            lse = m + jnp.log(jnp.sum(jnp.exp(logits - m), axis=1, keepdims=True))
            out_ref[...] = (logits - lse).astype(out_ref.dtype)

    return kernel


def rnn_forward(x_btd, params, *, max_time_chunk=32, matmul_dtype=jnp.float32):
    """x_btd: (B, T, D) batch-first input, like the PyTorch module."""
    wih0, bih0, wih_rest, bih_rest, whh, bhh, wfc, bfc = params
    B, T, D = x_btd.shape
    L, H, _ = whh.shape
    O = wfc.shape[1]
    assert L >= 2

    Bp = _round_up(B, 8)        # sublane-aligned batch
    Hp = _round_up(H, 128)      # lane-aligned hidden
    Op = _round_up(O, 128)      # lane-dense output block
    Tc = _pick_time_chunk(T, max_time_chunk)

    f32 = jnp.float32
    mm = matmul_dtype

    def pad2(a, r, c):
        return jnp.pad(a.astype(f32), ((0, r - a.shape[0]), (0, c - a.shape[1])))

    # Padded / fused weights (computed once; negligible next to the recurrence).
    wih0_p = pad2(wih0, D, Hp).astype(mm)
    b0_p = pad2(bih0 + bhh[0], 1, Hp)                              # folded layer-0 bias
    whh0_p = pad2(whh[0], Hp, Hp).astype(mm)
    wcat_p = jnp.stack(
        [jnp.concatenate([pad2(wih_rest[l], Hp, Hp),
                          pad2(whh[l + 1], Hp, Hp)], axis=0)
         for l in range(L - 1)], axis=0).astype(mm)                # (L-1, 2Hp, Hp)
    bcat_p = jnp.stack([pad2(bih_rest[l] + bhh[l + 1], 1, Hp)
                        for l in range(L - 1)], axis=0)            # (L-1, 1, Hp)
    wfc_p = pad2(wfc, Hp, Op).astype(mm)
    bfc_p = pad2(bfc, 1, Op)

    # Time-major, batch-padded, flattened to (T*Bp, D): each grid step then gets
    # a sublane/lane-aligned (Tc*Bp, D) slab with no in-kernel transpose.
    x_tbd = jnp.transpose(x_btd, (1, 0, 2)).astype(mm)
    x_tbd = jnp.pad(x_tbd, ((0, 0), (0, Bp - B), (0, 0)))
    x2d = x_tbd.reshape(T * Bp, D)

    kernel = _make_rnn_kernel(L, Tc, Bp, O)
    const = lambda shape: pl.BlockSpec(shape, lambda c: (0,) * len(shape))

    out_p = pl.pallas_call(
        kernel,
        out_shape=jax.ShapeDtypeStruct((Bp, Op), jnp.float32),
        grid_spec=pltpu.PrefetchScalarGridSpec(
            num_scalar_prefetch=0,
            grid=(T // Tc,),
            in_specs=[
                pl.BlockSpec((Tc * Bp, D), lambda c: (c, 0)),  # x time-chunk slab
                const((D, Hp)),               # wih0
                const((1, Hp)),               # folded layer-0 bias
                const((Hp, Hp)),              # whh0
                const((L - 1, 2 * Hp, Hp)),   # fused [Wih;Whh] for layers 1..L-1
                const((L - 1, 1, Hp)),        # folded biases for layers 1..L-1
                const((Hp, Op)),              # fc weight
                const((1, Op)),               # fc bias
            ],
            out_specs=pl.BlockSpec((Bp, Op), lambda c: (0, 0)),
            scratch_shapes=[pltpu.VMEM((L, Bp, Hp), jnp.float32)],
        ),
        compiler_params=pltpu.CompilerParams(
            dimension_semantics=("arbitrary",),   # time is a serial recurrence
            vmem_limit_bytes=32 * 1024 * 1024,    # explicit, ample headroom here
        ),
    )(x2d, wih0_p, b0_p, whh0_p, wcat_p, bcat_p, wfc_p, bfc_p)

    return out_p[:B, :O]


def init_params(key, input_dim, hidden_dim, layer_dim, output_dim):
    """Deterministic parameter init (uniform, like PyTorch's default scale).

    Weights are stored pre-transposed ([in, out]) so kernels compute x @ W.
    """
    assert layer_dim >= 2
    ks = jax.random.split(key, 8)
    bound = 1.0 / jnp.sqrt(hidden_dim)
    u = lambda k, shape: jax.random.uniform(k, shape, jnp.float32, -bound, bound)
    wih0 = u(ks[0], (input_dim, hidden_dim))
    bih0 = u(ks[1], (1, hidden_dim))
    wih_rest = u(ks[2], (layer_dim - 1, hidden_dim, hidden_dim))
    bih_rest = u(ks[3], (layer_dim - 1, 1, hidden_dim))
    whh = u(ks[4], (layer_dim, hidden_dim, hidden_dim))
    bhh = u(ks[5], (layer_dim, 1, hidden_dim))
    wfc = u(ks[6], (hidden_dim, output_dim))
    bfc = u(ks[7], (1, output_dim))
    return (wih0, bih0, wih_rest, bih_rest, whh, bhh, wfc, bfc)


def rnn_forward_ref(x_btd, params):
    """Pure-JAX reference for correctness checking (unfused, unpadded math)."""
    wih0, bih0, wih_rest, bih_rest, whh, bhh, wfc, bfc = params
    B, T, D = x_btd.shape
    L, _, H = whh.shape
    h = jnp.zeros((L, B, H), jnp.float32)

    def step(h, x_t):
        inp = x_t
        hs = []
        for l in range(L):
            if l == 0:
                pre = inp @ wih0 + bih0
            else:
                pre = inp @ wih_rest[l - 1] + bih_rest[l - 1]
            pre = pre + h[l] @ whh[l] + bhh[l]
            hn = jnp.tanh(pre)
            hs.append(hn)
            inp = hn
        return jnp.stack(hs, 0), inp

    h, _ = lax.scan(step, h, jnp.transpose(x_btd, (1, 0, 2)))
    logits = h[L - 1] @ wfc + bfc
    return logits - jax.scipy.special.logsumexp(logits, axis=1, keepdims=True)


if __name__ == "__main__":
    # Small shapes consistent with the module's forward:
    # batch=2, seq=8, input_dim=16, hidden_dim=32, layer_dim=2, output_dim=8
    B, T, D, H, L, O = 2, 8, 16, 32, 2, 8

    key = jax.random.PRNGKey(0)
    kx, kp = jax.random.split(key)
    x = jax.random.normal(kx, (B, T, D), dtype=jnp.float32)
    params = init_params(kp, D, H, L, O)

    fwd = jax.jit(rnn_forward)
    out = jax.block_until_ready(fwd(x, params))
    ref = jax.block_until_ready(rnn_forward_ref(x, params))

    assert out.shape == (B, O)
    assert jnp.allclose(out, ref, atol=1e-4, rtol=1e-4), (out, ref)
    print("KERNEL_OK")
</pallas_src>

<mosaic_0001>
module attributes {stable_mosaic.version = 11 : i64} {
  func.func @kernel(%arg0: i32, %arg1: memref<64x16xf32, #tpu.memory_space<vmem>>, %arg2: memref<16x128xf32, #tpu.memory_space<vmem>>, %arg3: memref<1x128xf32, #tpu.memory_space<vmem>>, %arg4: memref<128x128xf32, #tpu.memory_space<vmem>>, %arg5: memref<1x256x128xf32, #tpu.memory_space<vmem>>, %arg6: memref<1x1x128xf32, #tpu.memory_space<vmem>>, %arg7: memref<128x128xf32, #tpu.memory_space<vmem>>, %arg8: memref<1x128xf32, #tpu.memory_space<vmem>>, %arg9: memref<8x128xf32, #tpu.memory_space<vmem>>, %arg10: memref<2x8x128xf32, #tpu.memory_space<vmem>>) attributes {dimension_semantics = [#tpu.dimension_semantics<arbitrary>], iteration_bounds = array<i64: 1>, scalar_prefetch = 0 : i64, scratch_operands = 1 : i64, tpu.core_type = #tpu.core_type<tc>, window_params = [{transform_indices = @transform_0, window_bounds = array<i64: 64, 16>}, {pipeline_mode = #tpu.pipeline_mode<synchronous>, transform_indices = @transform_1, window_bounds = array<i64: 16, 128>}, {pipeline_mode = #tpu.pipeline_mode<synchronous>, transform_indices = @transform_2, window_bounds = array<i64: 1, 128>}, {pipeline_mode = #tpu.pipeline_mode<synchronous>, transform_indices = @transform_3, window_bounds = array<i64: 128, 128>}, {pipeline_mode = #tpu.pipeline_mode<synchronous>, transform_indices = @transform_4, window_bounds = array<i64: 1, 256, 128>}, {pipeline_mode = #tpu.pipeline_mode<synchronous>, transform_indices = @transform_5, window_bounds = array<i64: 1, 1, 128>}, {pipeline_mode = #tpu.pipeline_mode<synchronous>, transform_indices = @transform_6, window_bounds = array<i64: 128, 128>}, {pipeline_mode = #tpu.pipeline_mode<synchronous>, transform_indices = @transform_7, window_bounds = array<i64: 1, 128>}, {pipeline_mode = #tpu.pipeline_mode<synchronous>, transform_indices = @transform_8, window_bounds = array<i64: 8, 128>}]} {
    %c0_i32 = arith.constant 0 : i32
    %0 = arith.cmpi eq, %arg0, %c0_i32 : i32
    %1 = arith.extui %0 : i1 to i32
    %c0_i32_0 = arith.constant 0 : i32
    %2 = arith.cmpi ne, %1, %c0_i32_0 : i32
    scf.if %2 {
      %cst_99 = arith.constant 0.000000e+00 : f32
      %134 = vector.broadcast %cst_99 : f32 to vector<2x8x128xf32>
      %c0_100 = arith.constant 0 : index
      %c0_101 = arith.constant 0 : index
      %c0_102 = arith.constant 0 : index
      %135 = vector.load %arg10[%c0_100, %c0_101, %c0_102] : memref<2x8x128xf32, #tpu.memory_space<vmem>>, vector<2x8x128xf32>
      tpu.vector_store %arg10[%c0_100, %c0_101, %c0_102], %134 {strides = array<i32>} : memref<2x8x128xf32, #tpu.memory_space<vmem>>, vector<2x8x128xf32>,
    } else {
    }
    %c0 = arith.constant 0 : index
    %c0_1 = arith.constant 0 : index
    %3 = vector.load %arg1[%c0, %c0_1] : memref<64x16xf32, #tpu.memory_space<vmem>>, vector<64x16xf32>
    %c0_2 = arith.constant 0 : index
    %c0_3 = arith.constant 0 : index
    %4 = vector.load %arg2[%c0_2, %c0_3] : memref<16x128xf32, #tpu.memory_space<vmem>>, vector<16x128xf32>
    %cst = arith.constant dense<0.000000e+00> : vector<64x128xf32>
    %5 = tpu.matmul %3, %4, %cst {dimension_numbers = #tpu.dot_dimension_numbers<[1], [0], [0], [1], [0, 0, 1, 1], [], []>} : vector<64x16xf32>, vector<16x128xf32>, vector<64x128xf32> -> vector<64x128xf32>
    %c0_4 = arith.constant 0 : index
    %c0_5 = arith.constant 0 : index
    %6 = vector.load %arg3[%c0_4, %c0_5] : memref<1x128xf32, #tpu.memory_space<vmem>>, vector<1x128xf32>
    %7 = vector.broadcast %6 : vector<1x128xf32> to vector<64x128xf32>
    %8 = arith.addf %5, %7 : vector<64x128xf32>
    %c0_6 = arith.constant 0 : index
    %c0_7 = arith.constant 0 : index
    %c0_8 = arith.constant 0 : index
    %9 = vector.load %arg10[%c0_6, %c0_7, %c0_8] : memref<2x8x128xf32, #tpu.memory_space<vmem>>, vector<1x8x128xf32>
    %10 = vector.shape_cast %9 : vector<1x8x128xf32> to vector<8x128xf32>
    %c1 = arith.constant 1 : index
    %c0_9 = arith.constant 0 : index
    %c0_10 = arith.constant 0 : index
    %11 = vector.load %arg10[%c1, %c0_9, %c0_10] : memref<2x8x128xf32, #tpu.memory_space<vmem>>, vector<1x8x128xf32>
    %12 = vector.shape_cast %11 : vector<1x8x128xf32> to vector<8x128xf32>
    %13 = vector.extract_strided_slice %8 {offsets = [0, 0], sizes = [8, 128], strides = [1, 1]} : vector<64x128xf32> to vector<8x128xf32>
    %c0_11 = arith.constant 0 : index
    %c0_12 = arith.constant 0 : index
    %14 = vector.load %arg4[%c0_11, %c0_12] : memref<128x128xf32, #tpu.memory_space<vmem>>, vector<128x128xf32>
    %cst_13 = arith.constant dense<0.000000e+00> : vector<8x128xf32>
    %15 = tpu.matmul %10, %14, %cst_13 {dimension_numbers = #tpu.dot_dimension_numbers<[1], [0], [0], [1], [0, 0, 1, 1], [], []>} : vector<8x128xf32>, vector<128x128xf32>, vector<8x128xf32> -> vector<8x128xf32>
    %16 = arith.addf %13, %15 : vector<8x128xf32>
    %17 = math.tanh %16 : vector<8x128xf32>
    %18 = tpu.concatenate %17, %12 in 1 : vector<8x128xf32>, vector<8x128xf32> -> vector<8x256xf32>
    %c0_14 = arith.constant 0 : index
    %c0_15 = arith.constant 0 : index
    %c0_16 = arith.constant 0 : index
    %19 = vector.load %arg5[%c0_14, %c0_15, %c0_16] : memref<1x256x128xf32, #tpu.memory_space<vmem>>, vector<1x256x128xf32>
    %20 = vector.shape_cast %19 : vector<1x256x128xf32> to vector<256x128xf32>
    %cst_17 = arith.constant dense<0.000000e+00> : vector<8x128xf32>
    %21 = tpu.matmul %18, %20, %cst_17 {dimension_numbers = #tpu.dot_dimension_numbers<[1], [0], [0], [1], [0, 0, 1, 1], [], []>} : vector<8x256xf32>, vector<256x128xf32>, vector<8x128xf32> -> vector<8x128xf32>
    %c0_18 = arith.constant 0 : index
    %c0_19 = arith.constant 0 : index
    %c0_20 = arith.constant 0 : index
    %22 = vector.load %arg6[%c0_18, %c0_19, %c0_20] : memref<1x1x128xf32, #tpu.memory_space<vmem>>, vector<1x1x128xf32>
    %23 = vector.shape_cast %22 : vector<1x1x128xf32> to vector<1x128xf32>
    %24 = vector.broadcast %23 : vector<1x128xf32> to vector<8x128xf32>
    %25 = arith.addf %21, %24 : vector<8x128xf32>
    %26 = math.tanh %25 : vector<8x128xf32>
    %27 = vector.extract_strided_slice %8 {offsets = [8, 0], sizes = [8, 128], strides = [1, 1]} : vector<64x128xf32> to vector<8x128xf32>
    %c0_21 = arith.constant 0 : index
    %c0_22 = arith.constant 0 : index
    %28 = vector.load %arg4[%c0_21, %c0_22] : memref<128x128xf32, #tpu.memory_space<vmem>>, vector<128x128xf32>
    %cst_23 = arith.constant dense<0.000000e+00> : vector<8x128xf32>
    %29 = tpu.matmul %17, %28, %cst_23 {dimension_numbers = #tpu.dot_dimension_numbers<[1], [0], [0], [1], [0, 0, 1, 1], [], []>} : vector<8x128xf32>, vector<128x128xf32>, vector<8x128xf32> -> vector<8x128xf32>
    %30 = arith.addf %27, %29 : vector<8x128xf32>
    %31 = math.tanh %30 : vector<8x128xf32>
    %32 = tpu.concatenate %31, %26 in 1 : vector<8x128xf32>, vector<8x128xf32> -> vector<8x256xf32>
    %c0_24 = arith.constant 0 : index
    %c0_25 = arith.constant 0 : index
    %c0_26 = arith.constant 0 : index
    %33 = vector.load %arg5[%c0_24, %c0_25, %c0_26] : memref<1x256x128xf32, #tpu.memory_space<vmem>>, vector<1x256x128xf32>
    %34 = vector.shape_cast %33 : vector<1x256x128xf32> to vector<256x128xf32>
    %cst_27 = arith.constant dense<0.000000e+00> : vector<8x128xf32>
    %35 = tpu.matmul %32, %34, %cst_27 {dimension_numbers = #tpu.dot_dimension_numbers<[1], [0], [0], [1], [0, 0, 1, 1], [], []>} : vector<8x256xf32>, vector<256x128xf32>, vector<8x128xf32> -> vector<8x128xf32>
    %c0_28 = arith.constant 0 : index
    %c0_29 = arith.constant 0 : index
    %c0_30 = arith.constant 0 : index
    %36 = vector.load %arg6[%c0_28, %c0_29, %c0_30] : memref<1x1x128xf32, #tpu.memory_space<vmem>>, vector<1x1x128xf32>
    %37 = vector.shape_cast %36 : vector<1x1x128xf32> to vector<1x128xf32>
    %38 = vector.broadcast %37 : vector<1x128xf32> to vector<8x128xf32>
    %39 = arith.addf %35, %38 : vector<8x128xf32>
    %40 = math.tanh %39 : vector<8x128xf32>
    %41 = vector.extract_strided_slice %8 {offsets = [16, 0], sizes = [8, 128], strides = [1, 1]} : vector<64x128xf32> to vector<8x128xf32>
    %c0_31 = arith.constant 0 : index
    %c0_32 = arith.constant 0 : index
    %42 = vector.load %arg4[%c0_31, %c0_32] : memref<128x128xf32, #tpu.memory_space<vmem>>, vector<128x128xf32>
    %cst_33 = arith.constant dense<0.000000e+00> : vector<8x128xf32>
    %43 = tpu.matmul %31, %42, %cst_33 {dimension_numbers = #tpu.dot_dimension_numbers<[1], [0], [0], [1], [0, 0, 1, 1], [], []>} : vector<8x128xf32>, vector<128x128xf32>, vector<8x128xf32> -> vector<8x128xf32>
    %44 = arith.addf %41, %43 : vector<8x128xf32>
    %45 = math.tanh %44 : vector<8x128xf32>
    %46 = tpu.concatenate %45, %40 in 1 : vector<8x128xf32>, vector<8x128xf32> -> vector<8x256xf32>
    %c0_34 = arith.constant 0 : index
    %c0_35 = arith.constant 0 : index
    %c0_36 = arith.constant 0 : index
    %47 = vector.load %arg5[%c0_34, %c0_35, %c0_36] : memref<1x256x128xf32, #tpu.memory_space<vmem>>, vector<1x256x128xf32>
    %48 = vector.shape_cast %47 : vector<1x256x128xf32> to vector<256x128xf32>
    %cst_37 = arith.constant dense<0.000000e+00> : vector<8x128xf32>
    %49 = tpu.matmul %46, %48, %cst_37 {dimension_numbers = #tpu.dot_dimension_numbers<[1], [0], [0], [1], [0, 0, 1, 1], [], []>} : vector<8x256xf32>, vector<256x128xf32>, vector<8x128xf32> -> vector<8x128xf32>
    %c0_38 = arith.constant 0 : index
    %c0_39 = arith.constant 0 : index
    %c0_40 = arith.constant 0 : index
    %50 = vector.load %arg6[%c0_38, %c0_39, %c0_40] : memref<1x1x128xf32, #tpu.memory_space<vmem>>, vector<1x1x128xf32>
    %51 = vector.shape_cast %50 : vector<1x1x128xf32> to vector<1x128xf32>
    %52 = vector.broadcast %51 : vector<1x128xf32> to vector<8x128xf32>
    %53 = arith.addf %49, %52 : vector<8x128xf32>
    %54 = math.tanh %53 : vector<8x128xf32>
    %55 = vector.extract_strided_slice %8 {offsets = [24, 0], sizes = [8, 128], strides = [1, 1]} : vector<64x128xf32> to vector<8x128xf32>
    %c0_41 = arith.constant 0 : index
    %c0_42 = arith.constant 0 : index
    %56 = vector.load %arg4[%c0_41, %c0_42] : memref<128x128xf32, #tpu.memory_space<vmem>>, vector<128x128xf32>
    %cst_43 = arith.constant dense<0.000000e+00> : vector<8x128xf32>
    %57 = tpu.matmul %45, %56, %cst_43 {dimension_numbers = #tpu.dot_dimension_numbers<[1], [0], [0], [1], [0, 0, 1, 1], [], []>} : vector<8x128xf32>, vector<128x128xf32>, vector<8x128xf32> -> vector<8x128xf32>
    %58 = arith.addf %55, %57 : vector<8x128xf32>
    %59 = math.tanh %58 : vector<8x128xf32>
    %60 = tpu.concatenate %59, %54 in 1 : vector<8x128xf32>, vector<8x128xf32> -> vector<8x256xf32>
    %c0_44 = arith.constant 0 : index
    %c0_45 = arith.constant 0 : index
    %c0_46 = arith.constant 0 : index
    %61 = vector.load %arg5[%c0_44, %c0_45, %c0_46] : memref<1x256x128xf32, #tpu.memory_space<vmem>>, vector<1x256x128xf32>
    %62 = vector.shape_cast %61 : vector<1x256x128xf32> to vector<256x128xf32>
    %cst_47 = arith.constant dense<0.000000e+00> : vector<8x128xf32>
    %63 = tpu.matmul %60, %62, %cst_47 {dimension_numbers = #tpu.dot_dimension_numbers<[1], [0], [0], [1], [0, 0, 1, 1], [], []>} : vector<8x256xf32>, vector<256x128xf32>, vector<8x128xf32> -> vector<8x128xf32>
    %c0_48 = arith.constant 0 : index
    %c0_49 = arith.constant 0 : index
    %c0_50 = arith.constant 0 : index
    %64 = vector.load %arg6[%c0_48, %c0_49, %c0_50] : memref<1x1x128xf32, #tpu.memory_space<vmem>>, vector<1x1x128xf32>
    %65 = vector.shape_cast %64 : vector<1x1x128xf32> to vector<1x128xf32>
    %66 = vector.broadcast %65 : vector<1x128xf32> to vector<8x128xf32>
    %67 = arith.addf %63, %66 : vector<8x128xf32>
    %68 = math.tanh %67 : vector<8x128xf32>
    %69 = vector.extract_strided_slice %8 {offsets = [32, 0], sizes = [8, 128], strides = [1, 1]} : vector<64x128xf32> to vector<8x128xf32>
    %c0_51 = arith.constant 0 : index
    %c0_52 = arith.constant 0 : index
    %70 = vector.load %arg4[%c0_51, %c0_52] : memref<128x128xf32, #tpu.memory_space<vmem>>, vector<128x128xf32>
    %cst_53 = arith.constant dense<0.000000e+00> : vector<8x128xf32>
    %71 = tpu.matmul %59, %70, %cst_53 {dimension_numbers = #tpu.dot_dimension_numbers<[1], [0], [0], [1], [0, 0, 1, 1], [], []>} : vector<8x128xf32>, vector<128x128xf32>, vector<8x128xf32> -> vector<8x128xf32>
    %72 = arith.addf %69, %71 : vector<8x128xf32>
    %73 = math.tanh %72 : vector<8x128xf32>
    %74 = tpu.concatenate %73, %68 in 1 : vector<8x128xf32>, vector<8x128xf32> -> vector<8x256xf32>
    %c0_54 = arith.constant 0 : index
    %c0_55 = arith.constant 0 : index
    %c0_56 = arith.constant 0 : index
    %75 = vector.load %arg5[%c0_54, %c0_55, %c0_56] : memref<1x256x128xf32, #tpu.memory_space<vmem>>, vector<1x256x128xf32>
    %76 = vector.shape_cast %75 : vector<1x256x128xf32> to vector<256x128xf32>
    %cst_57 = arith.constant dense<0.000000e+00> : vector<8x128xf32>
    %77 = tpu.matmul %74, %76, %cst_57 {dimension_numbers = #tpu.dot_dimension_numbers<[1], [0], [0], [1], [0, 0, 1, 1], [], []>} : vector<8x256xf32>, vector<256x128xf32>, vector<8x128xf32> -> vector<8x128xf32>
    %c0_58 = arith.constant 0 : index
    %c0_59 = arith.constant 0 : index
    %c0_60 = arith.constant 0 : index
    %78 = vector.load %arg6[%c0_58, %c0_59, %c0_60] : memref<1x1x128xf32, #tpu.memory_space<vmem>>, vector<1x1x128xf32>
    %79 = vector.shape_cast %78 : vector<1x1x128xf32> to vector<1x128xf32>
    %80 = vector.broadcast %79 : vector<1x128xf32> to vector<8x128xf32>
    %81 = arith.addf %77, %80 : vector<8x128xf32>
    %82 = math.tanh %81 : vector<8x128xf32>
    %83 = vector.extract_strided_slice %8 {offsets = [40, 0], sizes = [8, 128], strides = [1, 1]} : vector<64x128xf32> to vector<8x128xf32>
    %c0_61 = arith.constant 0 : index
    %c0_62 = arith.constant 0 : index
    %84 = vector.load %arg4[%c0_61, %c0_62] : memref<128x128xf32, #tpu.memory_space<vmem>>, vector<128x128xf32>
    %cst_63 = arith.constant dense<0.000000e+00> : vector<8x128xf32>
    %85 = tpu.matmul %73, %84, %cst_63 {dimension_numbers = #tpu.dot_dimension_numbers<[1], [0], [0], [1], [0, 0, 1, 1], [], []>} : vector<8x128xf32>, vector<128x128xf32>, vector<8x128xf32> -> vector<8x128xf32>
    %86 = arith.addf %83, %85 : vector<8x128xf32>
    %87 = math.tanh %86 : vector<8x128xf32>
    %88 = tpu.concatenate %87, %82 in 1 : vector<8x128xf32>, vector<8x128xf32> -> vector<8x256xf32>
    %c0_64 = arith.constant 0 : index
    %c0_65 = arith.constant 0 : index
    %c0_66 = arith.constant 0 : index
    %89 = vector.load %arg5[%c0_64, %c0_65, %c0_66] : memref<1x256x128xf32, #tpu.memory_space<vmem>>, vector<1x256x128xf32>
    %90 = vector.shape_cast %89 : vector<1x256x128xf32> to vector<256x128xf32>
    %cst_67 = arith.constant dense<0.000000e+00> : vector<8x128xf32>
    %91 = tpu.matmul %88, %90, %cst_67 {dimension_numbers = #tpu.dot_dimension_numbers<[1], [0], [0], [1], [0, 0, 1, 1], [], []>} : vector<8x256xf32>, vector<256x128xf32>, vector<8x128xf32> -> vector<8x128xf32>
    %c0_68 = arith.constant 0 : index
    %c0_69 = arith.constant 0 : index
    %c0_70 = arith.constant 0 : index
    %92 = vector.load %arg6[%c0_68, %c0_69, %c0_70] : memref<1x1x128xf32, #tpu.memory_space<vmem>>, vector<1x1x128xf32>
    %93 = vector.shape_cast %92 : vector<1x1x128xf32> to vector<1x128xf32>
    %94 = vector.broadcast %93 : vector<1x128xf32> to vector<8x128xf32>
    %95 = arith.addf %91, %94 : vector<8x128xf32>
    %96 = math.tanh %95 : vector<8x128xf32>
    %97 = vector.extract_strided_slice %8 {offsets = [48, 0], sizes = [8, 128], strides = [1, 1]} : vector<64x128xf32> to vector<8x128xf32>
    %c0_71 = arith.constant 0 : index
    %c0_72 = arith.constant 0 : index
    %98 = vector.load %arg4[%c0_71, %c0_72] : memref<128x128xf32, #tpu.memory_space<vmem>>, vector<128x128xf32>
    %cst_73 = arith.constant dense<0.000000e+00> : vector<8x128xf32>
    %99 = tpu.matmul %87, %98, %cst_73 {dimension_numbers = #tpu.dot_dimension_numbers<[1], [0], [0], [1], [0, 0, 1, 1], [], []>} : vector<8x128xf32>, vector<128x128xf32>, vector<8x128xf32> -> vector<8x128xf32>
    %100 = arith.addf %97, %99 : vector<8x128xf32>
    %101 = math.tanh %100 : vector<8x128xf32>
    %102 = tpu.concatenate %101, %96 in 1 : vector<8x128xf32>, vector<8x128xf32> -> vector<8x256xf32>
    %c0_74 = arith.constant 0 : index
    %c0_75 = arith.constant 0 : index
    %c0_76 = arith.constant 0 : index
    %103 = vector.load %arg5[%c0_74, %c0_75, %c0_76] : memref<1x256x128xf32, #tpu.memory_space<vmem>>, vector<1x256x128xf32>
    %104 = vector.shape_cast %103 : vector<1x256x128xf32> to vector<256x128xf32>
    %cst_77 = arith.constant dense<0.000000e+00> : vector<8x128xf32>
    %105 = tpu.matmul %102, %104, %cst_77 {dimension_numbers = #tpu.dot_dimension_numbers<[1], [0], [0], [1], [0, 0, 1, 1], [], []>} : vector<8x256xf32>, vector<256x128xf32>, vector<8x128xf32> -> vector<8x128xf32>
    %c0_78 = arith.constant 0 : index
    %c0_79 = arith.constant 0 : index
    %c0_80 = arith.constant 0 : index
    %106 = vector.load %arg6[%c0_78, %c0_79, %c0_80] : memref<1x1x128xf32, #tpu.memory_space<vmem>>, vector<1x1x128xf32>
    %107 = vector.shape_cast %106 : vector<1x1x128xf32> to vector<1x128xf32>
    %108 = vector.broadcast %107 : vector<1x128xf32> to vector<8x128xf32>
    %109 = arith.addf %105, %108 : vector<8x128xf32>
    %110 = math.tanh %109 : vector<8x128xf32>
    %111 = vector.extract_strided_slice %8 {offsets = [56, 0], sizes = [8, 128], strides = [1, 1]} : vector<64x128xf32> to vector<8x128xf32>
    %c0_81 = arith.constant 0 : index
    %c0_82 = arith.constant 0 : index
    %112 = vector.load %arg4[%c0_81, %c0_82] : memref<128x128xf32, #tpu.memory_space<vmem>>, vector<128x128xf32>
    %cst_83 = arith.constant dense<0.000000e+00> : vector<8x128xf32>
    %113 = tpu.matmul %101, %112, %cst_83 {dimension_numbers = #tpu.dot_dimension_numbers<[1], [0], [0], [1], [0, 0, 1, 1], [], []>} : vector<8x128xf32>, vector<128x128xf32>, vector<8x128xf32> -> vector<8x128xf32>
    %114 = arith.addf %111, %113 : vector<8x128xf32>
    %115 = math.tanh %114 : vector<8x128xf32>
    %116 = tpu.concatenate %115, %110 in 1 : vector<8x128xf32>, vector<8x128xf32> -> vector<8x256xf32>
    %c0_84 = arith.constant 0 : index
    %c0_85 = arith.constant 0 : index
    %c0_86 = arith.constant 0 : index
    %117 = vector.load %arg5[%c0_84, %c0_85, %c0_86] : memref<1x256x128xf32, #tpu.memory_space<vmem>>, vector<1x256x128xf32>
    %118 = vector.shape_cast %117 : vector<1x256x128xf32> to vector<256x128xf32>
    %cst_87 = arith.constant dense<0.000000e+00> : vector<8x128xf32>
    %119 = tpu.matmul %116, %118, %cst_87 {dimension_numbers = #tpu.dot_dimension_numbers<[1], [0], [0], [1], [0, 0, 1, 1], [], []>} : vector<8x256xf32>, vector<256x128xf32>, vector<8x128xf32> -> vector<8x128xf32>
    %c0_88 = arith.constant 0 : index
    %c0_89 = arith.constant 0 : index
    %c0_90 = arith.constant 0 : index
    %120 = vector.load %arg6[%c0_88, %c0_89, %c0_90] : memref<1x1x128xf32, #tpu.memory_space<vmem>>, vector<1x1x128xf32>
    %121 = vector.shape_cast %120 : vector<1x1x128xf32> to vector<1x128xf32>
    %122 = vector.broadcast %121 : vector<1x128xf32> to vector<8x128xf32>
    %123 = arith.addf %119, %122 : vector<8x128xf32>
    %124 = math.tanh %123 : vector<8x128xf32>
    %c0_91 = arith.constant 0 : index
    %c0_92 = arith.constant 0 : index
    %c0_93 = arith.constant 0 : index
    %125 = vector.load %arg10[%c0_91, %c0_92, %c0_93] : memref<2x8x128xf32, #tpu.memory_space<vmem>>, vector<1x8x128xf32>
    %126 = vector.shape_cast %125 : vector<1x8x128xf32> to vector<8x128xf32>
    %127 = vector.shape_cast %115 : vector<8x128xf32> to vector<1x8x128xf32>
    tpu.vector_store %arg10[%c0_91, %c0_92, %c0_93], %127 {strides = array<i32>} : memref<2x8x128xf32, #tpu.memory_space<vmem>>, vector<1x8x128xf32>,
    %c1_94 = arith.constant 1 : index
    %c0_95 = arith.constant 0 : index
    %c0_96 = arith.constant 0 : index
    %128 = vector.load %arg10[%c1_94, %c0_95, %c0_96] : memref<2x8x128xf32, #tpu.memory_space<vmem>>, vector<1x8x128xf32>
    %129 = vector.shape_cast %128 : vector<1x8x128xf32> to vector<8x128xf32>
    %130 = vector.shape_cast %124 : vector<8x128xf32> to vector<1x8x128xf32>
    tpu.vector_store %arg10[%c1_94, %c0_95, %c0_96], %130 {strides = array<i32>} : memref<2x8x128xf32, #tpu.memory_space<vmem>>, vector<1x8x128xf32>,
    %c0_i32_97 = arith.constant 0 : i32
    %131 = arith.cmpi eq, %arg0, %c0_i32_97 : i32
    %132 = arith.extui %131 : i1 to i32
    %c0_i32_98 = arith.constant 0 : i32
    %133 = arith.cmpi ne, %132, %c0_i32_98 : i32
    scf.if %133 {
      %c0_99 = arith.constant 0 : index
      %c0_100 = arith.constant 0 : index
      %134 = vector.load %arg7[%c0_99, %c0_100] : memref<128x128xf32, #tpu.memory_space<vmem>>, vector<128x128xf32>
      %cst_101 = arith.constant dense<0.000000e+00> : vector<8x128xf32>
      %135 = tpu.matmul %124, %134, %cst_101 {dimension_numbers = #tpu.dot_dimension_numbers<[1], [0], [0], [1], [0, 0, 1, 1], [], []>} : vector<8x128xf32>, vector<128x128xf32>, vector<8x128xf32> -> vector<8x128xf32>
      %c0_102 = arith.constant 0 : index
      %c0_103 = arith.constant 0 : index
      %136 = vector.load %arg8[%c0_102, %c0_103] : memref<1x128xf32, #tpu.memory_space<vmem>>, vector<1x128xf32>
      %137 = vector.broadcast %136 : vector<1x128xf32> to vector<8x128xf32>
      %138 = arith.addf %135, %137 : vector<8x128xf32>
      %139 = tpu.iota {dimensions = array<i32: 1>} : vector<8x128xi32>
      %c8_i32 = arith.constant 8 : i32
      %140 = vector.broadcast %c8_i32 : i32 to vector<8x128xi32>
      %141 = arith.cmpi slt, %139, %140 : vector<8x128xi32>
      %cst_104 = arith.constant -1.000000e+30 : f32
      %142 = vector.broadcast %cst_104 : f32 to vector<8x128xf32>
      %143 = arith.select %141, %138, %142 : vector<8x128xi1>, vector<8x128xf32>
      %cst_105 = arith.constant dense<0xFF800000> : vector<8xf32>
      %144 = vector.multi_reduction <maximumf>, %143, %cst_105 [1] : vector<8x128xf32> to vector<8xf32>
      %145 = vector.shape_cast %144 : vector<8xf32> to vector<8x1xf32>
      %146 = vector.broadcast %145 : vector<8x1xf32> to vector<8x128xf32>
      %147 = arith.subf %143, %146 : vector<8x128xf32>
      %148 = math.exp %147 : vector<8x128xf32>
      %cst_106 = arith.constant dense<0.000000e+00> : vector<8xf32>
      %149 = vector.multi_reduction <add>, %148, %cst_106 [1] : vector<8x128xf32> to vector<8xf32>
      %150 = vector.shape_cast %149 : vector<8xf32> to vector<8x1xf32>
      %151 = math.log %150 : vector<8x1xf32>
      %152 = arith.addf %145, %151 : vector<8x1xf32>
      %153 = vector.broadcast %152 : vector<8x1xf32> to vector<8x128xf32>
      %154 = arith.subf %143, %153 : vector<8x128xf32>
      %c0_107 = arith.constant 0 : index
      %c0_108 = arith.constant 0 : index
      %155 = vector.load %arg9[%c0_107, %c0_108] : memref<8x128xf32, #tpu.memory_space<vmem>>, vector<8x128xf32>
      tpu.vector_store %arg9[%c0_107, %c0_108], %154 {strides = array<i32>} : memref<8x128xf32, #tpu.memory_space<vmem>>, vector<8x128xf32>,
    } else {
    }
    return
  }
  func.func @transform_0(%arg0: i32) -> (i32, i32) {
    %c0_i32 = arith.constant 0 : i32
    %c0_i32_0 = arith.constant 0 : i32
    return %arg0, %c0_i32 : i32, i32
  }
  func.func @transform_1(%arg0: i32) -> (i32, i32) {
    %c0_i32 = arith.constant 0 : i32
    %c0_i32_0 = arith.constant 0 : i32
    %c0_i32_1 = arith.constant 0 : i32
    return %c0_i32, %c0_i32_0 : i32, i32
  }
  func.func @transform_2(%arg0: i32) -> (i32, i32) {
    %c0_i32 = arith.constant 0 : i32
    %c0_i32_0 = arith.constant 0 : i32
    %c0_i32_1 = arith.constant 0 : i32
    return %c0_i32, %c0_i32_0 : i32, i32
  }
  func.func @transform_3(%arg0: i32) -> (i32, i32) {
    %c0_i32 = arith.constant 0 : i32
    %c0_i32_0 = arith.constant 0 : i32
    %c0_i32_1 = arith.constant 0 : i32
    return %c0_i32, %c0_i32_0 : i32, i32
  }
  func.func @transform_4(%arg0: i32) -> (i32, i32, i32) {
    %c0_i32 = arith.constant 0 : i32
    %c0_i32_0 = arith.constant 0 : i32
    %c0_i32_1 = arith.constant 0 : i32
    %c0_i32_2 = arith.constant 0 : i32
    return %c0_i32, %c0_i32_0, %c0_i32_1 : i32, i32, i32
  }
  func.func @transform_5(%arg0: i32) -> (i32, i32, i32) {
    %c0_i32 = arith.constant 0 : i32
    %c0_i32_0 = arith.constant 0 : i32
    %c0_i32_1 = arith.constant 0 : i32
    %c0_i32_2 = arith.constant 0 : i32
    return %c0_i32, %c0_i32_0, %c0_i32_1 : i32, i32, i32
  }
  func.func @transform_6(%arg0: i32) -> (i32, i32) {
    %c0_i32 = arith.constant 0 : i32
    %c0_i32_0 = arith.constant 0 : i32
    %c0_i32_1 = arith.constant 0 : i32
    return %c0_i32, %c0_i32_0 : i32, i32
  }
  func.func @transform_7(%arg0: i32) -> (i32, i32) {
    %c0_i32 = arith.constant 0 : i32
    %c0_i32_0 = arith.constant 0 : i32
    %c0_i32_1 = arith.constant 0 : i32
    return %c0_i32, %c0_i32_0 : i32, i32
  }
  func.func @transform_8(%arg0: i32) -> (i32, i32) {
    %c0_i32 = arith.constant 0 : i32
    %c0_i32_0 = arith.constant 0 : i32
    %c0_i32_1 = arith.constant 0 : i32
    return %c0_i32, %c0_i32_0 : i32, i32
  }
}

</mosaic_0001>

<bundles_post_ra>
// kernel: rnn_forward.1
= control target key start
LH: loop header
LB: loop body
LE: loop exit
PB: predicated region body
PF: predicated region fallthrough
CT: control target
= control target key end

     0   :  { %v3464_v0 = vmov 0.0   ;;  %vm2375_vm0 = vmmov 0   ;;  %vm52_vm1 = vcmask 130048   ;;  %s3455_s3 = inlined_call_operand.vmem [shape: f32[128,128], index: 3, kind: input, shape index: {}]   ;;  %s3456_s1 = inlined_call_operand.vmem [shape: f32[16,128], index: 1, kind: input, shape index: {}]   ;;  %s3457_s0 = inlined_call_operand.vmem [shape: f32[64,16], index: 0, kind: input, shape index: {}]   ;;  %s3458_s4 = inlined_call_operand.vmem [shape: f32[1,256,128], index: 4, kind: input, shape index: {}]   ;;  %s3459_s2 = inlined_call_operand.vmem [shape: f32[1,128], index: 2, kind: input, shape index: {}]   ;;  %s3460_s5 = inlined_call_operand.vmem [shape: f32[1,1,128], index: 5, kind: input, shape index: {}]   ;;  %s3461_s6 = inlined_call_operand.vmem [shape: f32[128,128], index: 6, kind: input, shape index: {}]   ;;  %s3462_s7 = inlined_call_operand.vmem [shape: f32[1,128], index: 7, kind: input, shape index: {}]   ;;  %s3463_s8 = inlined_call_operand.vmem [shape: f32[8,128], index: 8, kind: output, shape index: {}]  }
   0x1   :  { %1972 = vmatprep.subr.mxu1 %v3464_v0  ;;  %v2425_v1 = vld [vmem:[%s3455_s3 + $0x78] sm:$0xff]  ;;  %v2430_v2 = vld [vmem:[%s3455_s3 + $0x70] sm:$0xff]  ;;  %2004 = vmatprep.mubr.msk.f32.mxu1 %vm2375_vm0, %v3464_v0  ;;  %v2439_v3 = vld [vmem:[%s3455_s3 + $0x68] sm:$0xff] }
   0x2   :  { %1973 = vmatpush3.msra.mxu1 %v2425_v1  ;;  %v44_v4 = vld [vmem:[%s3456_s1 + $0x8] sm:$0xff]  ;;  %v2449_v5 = vld [vmem:[%s3455_s3 + $0x60] sm:$0xff]  ;;  %v2462_v8 = vld [vmem:[%s3455_s3 + $0x58] sm:$0xff] }
   0x3   :  { %1974 = vmatprep.subr.mxu1 %v3464_v0  ;;  %1956 = vmatprep.subr.mxu0 %v44_v4  ;;  %v43_v6 = vld [vmem:[%s3456_s1] sm:$0xff]  ;;  %v36_v9 = vld [vmem:[%s3457_s0 + $0x8] sm:$0xff]  ;;  %v2471_v10 = vld [vmem:[%s3458_s4 + $0xf8] sm:$0xff] }
   0x4   :  { %1975 = vmatpush3.msra.mxu1 %v2430_v2  ;;  %1957 = vmatpush3.msra.mxu0 %v44_v4  ;;  %v35_v7 = vld [vmem:[%s3457_s0] sm:$0xff]  ;;  %v2477_v11 = vld [vmem:[%s3455_s3 + $0x50] sm:$0xff]  ;;  %v2483_v12 = vld [vmem:[%s3458_s4 + $0x78] sm:$0xff] }
   0x5   :  { %1976 = vmatprep.subr.mxu1 %v3464_v0  ;;  %1958 = vmatprep.subr.mxu0 %v43_v6  ;;  %v2490_v13 = vld [vmem:[%s3458_s4 + $0xf0] sm:$0xff]  ;;  %v2496_v14 = vld [vmem:[%s3455_s3 + $0x48] sm:$0xff]  ;;  %v2515_v17 = vld [vmem:[%s3455_s3 + $0x40] sm:$0xff] }
   0x6   :  { %1977 = vmatpush3.msra.mxu1 %v2439_v3  ;;  %1959 = vmatpush3.msra.mxu0 %v43_v6  ;;  %v2502_v15 = vld [vmem:[%s3458_s4 + $0x70] sm:$0xff]  ;;  %v2509_v16 = vld [vmem:[%s3458_s4 + $0xe8] sm:$0xff]  ;;  %v2528_v19 = vld [vmem:[%s3458_s4 + $0xe0] sm:$0xff] }
   0x7   :  { %1978 = vmatprep.subr.mxu1 %v3464_v0  ;;  %1960 = vmatprep.mubr.msk.f32.mxu0 %vm52_vm1, %v35_v7  ;;  %v2521_v18 = vld [vmem:[%s3458_s4 + $0x68] sm:$0xff]  ;;  %v2534_v20 = vld [vmem:[%s3455_s3 + $0x38] sm:$0xff]  ;;  %v2540_v21 = vld [vmem:[%s3458_s4 + $0x60] sm:$0xff] }
   0x8   :  { %1979 = vmatpush3.msra.mxu1 %v2449_v5  ;;  %1961 = vmatmul.mubr.msk.f32.vlgmr.msra.gmra.mxu0 %vm52_vm1, %v36_v9  ;;  %v2547_v22 = vld [vmem:[%s3458_s4 + $0xd8] sm:$0xff]  ;;  %v2553_v23 = vld [vmem:[%s3455_s3 + $0x30] sm:$0xff]  ;;  %v2562_v24 = vld [vmem:[%s3455_s3 + $0x28] sm:$0xff] }
   0x9   :  { %1980 = vmatprep.subr.mxu1 %v3464_v0  ;;  %1540 = vmatprep.subr.mxu0 %v2471_v10  ;;  %v2570_v25 = vld [vmem:[%s3455_s3 + $0x20] sm:$0xff]  ;;  %v2577_v26 = vld [vmem:[%s3455_s3 + $0x18] sm:$0xff]  ;;  %v2584_v27 = vld [vmem:[%s3455_s3 + $0x10] sm:$0xff] }
   0xa   :  { %1981 = vmatpush3.msra.mxu1 %v2462_v8  ;;  %1541 = vmatpush3.msra.mxu0 %v2483_v12  ;;  %v2591_v28 = vld [vmem:[%s3455_s3 + $0x8] sm:$0xff]  ;;  %v2598_v29 = vld [vmem:[%s3455_s3] sm:$0xff]  ;;  %v2642_v30 = vld [vmem:[%s3458_s4 + $0x58] sm:$0xff] }
   0xb   :  { %1982 = vmatprep.subr.mxu1 %v3464_v0  ;;  %1542 = vmatprep.subr.mxu0 %v2490_v13  ;;  %v2647_v31 = vld [vmem:[%s3458_s4 + $0xd0] sm:$0xff]  ;;  %v2659_v33 = vld [vmem:[%s3458_s4 + $0xc8] sm:$0xff]  ;;  %v2670_v35 = vld [vmem:[%s3458_s4 + $0xc0] sm:$0xff] }
   0xc   :  { %1983 = vmatpush3.msra.mxu1 %v2477_v11  ;;  %1543 = vmatpush3.msra.mxu0 %v2502_v15  ;;  %v2654_v32 = vld [vmem:[%s3458_s4 + $0x50] sm:$0xff]  ;;  %v2664_v34 = vld [vmem:[%s3458_s4 + $0x48] sm:$0xff]  ;;  %v2678_v36 = vld [vmem:[%s3458_s4 + $0x40] sm:$0xff] }
   0xd   :  { %1984 = vmatprep.subr.mxu1 %v3464_v0  ;;  %1544 = vmatprep.subr.mxu0 %v2509_v16  ;;  %v2684_v37 = vld [vmem:[%s3458_s4 + $0xb8] sm:$0xff]  ;;  %v37_v38 = vld [vmem:[%s3457_s0 + $0x10] sm:$0xff]  ;;  %v2715_v43 = vld [vmem:[%s3458_s4 + $0xa8] sm:$0xff] }
   0xe   :  { %1985 = vmatpush3.msra.mxu1 %v2496_v14  ;;  %1545 = vmatpush3.msra.mxu0 %v2521_v18  ;;  %v2693_v39 = vld [vmem:[%s3458_s4 + $0x38] sm:$0xff]  ;;  %v2703_v41 = vld [vmem:[%s3458_s4 + $0xb0] sm:$0xff]  ;;  %v39_v44 = vld [vmem:[%s3457_s0 + $0x20] sm:$0xff] }
   0xf   :  { %1986 = vmatprep.subr.mxu1 %v3464_v0  ;;  %1546 = vmatprep.subr.mxu0 %v2528_v19  ;;  %v38_v40 = vld [vmem:[%s3457_s0 + $0x18] sm:$0xff]  ;;  %v2710_v42 = vld [vmem:[%s3458_s4 + $0x30] sm:$0xff]  ;;  %v2725_v45 = vld [vmem:[%s3458_s4 + $0x28] sm:$0xff] }
  0x10   :  { %1987 = vmatpush3.msra.mxu1 %v2515_v17  ;;  %1547 = vmatpush3.msra.mxu0 %v2540_v21  ;;  %v40_v46 = vld [vmem:[%s3457_s0 + $0x28] sm:$0xff]  ;;  %v2733_v47 = vld [vmem:[%s3458_s4 + $0xa0] sm:$0xff]  ;;  %v41_v49 = vld [vmem:[%s3457_s0 + $0x30] sm:$0xff] }
  0x11   :  { %1988 = vmatprep.subr.mxu1 %v3464_v0  ;;  %1548 = vmatprep.subr.mxu0 %v2547_v22  ;;  %v2739_v48 = vld [vmem:[%s3458_s4 + $0x20] sm:$0xff]  ;;  %v2748_v50 = vld [vmem:[%s3458_s4 + $0x98] sm:$0xff]  ;;  %v2765_v53 = vld [vmem:[%s3458_s4 + $0x90] sm:$0xff] }
  0x12   :  { %1989 = vmatpush3.msra.mxu1 %v2534_v20  ;;  %1549 = vmatpush3.msra.mxu0 %v2642_v30  ;;  %v2755_v51 = vld [vmem:[%s3458_s4 + $0x18] sm:$0xff]  ;;  %v2771_v54 = vld [vmem:[%s3458_s4 + $0x10] sm:$0xff]  ;;  %v2777_v55 = vld [vmem:[%s3458_s4 + $0x88] sm:$0xff] }
  0x13   :  { %1990 = vmatprep.subr.mxu1 %v3464_v0  ;;  %1550 = vmatprep.subr.mxu0 %v2647_v31  ;;  %v42_v52 = vld [vmem:[%s3457_s0 + $0x38] sm:$0xff]  ;;  %v2784_v56 = vld [vmem:[%s3458_s4 + $0x8] sm:$0xff]  ;;  %v2790_v57 = vld [vmem:[%s3458_s4 + $0x80] sm:$0xff] }
  0x14   :  { %1991 = vmatpush3.msra.mxu1 %v2553_v23  ;;  %1551 = vmatpush3.msra.mxu0 %v2654_v32  ;;  %v2797_v58 = vld [vmem:[%s3458_s4] sm:$0xff] }
  0x15   :  { %1992 = vmatprep.subr.mxu1 %v3464_v0  ;;  %1552 = vmatprep.subr.mxu0 %v2659_v33  ;;  %v2808_v60 = vld [vmem:[%s3459_s2] ss:$0 sm:$0xff] }
  0x16   :  { %1993 = vmatpush3.msra.mxu1 %v2562_v24  ;;  %1553 = vmatpush3.msra.mxu0 %v2664_v34 }
  0x17   :  { %1994 = vmatprep.subr.mxu1 %v3464_v0  ;;  %1554 = vmatprep.subr.mxu0 %v2670_v35 }
  0x18   :  { %1995 = vmatpush3.msra.mxu1 %v2570_v25  ;;  %1555 = vmatpush3.msra.mxu0 %v2678_v36 }
  0x19   :  { %1996 = vmatprep.subr.mxu1 %v3464_v0  ;;  %1556 = vmatprep.subr.mxu0 %v2684_v37 }
  0x1a   :  { %1997 = vmatpush3.msra.mxu1 %v2577_v26  ;;  %1963 = vmatprep.mubr.msk.f32.mxu0 %vm52_vm1, %v37_v38 }
  0x1b   :  { %1998 = vmatprep.subr.mxu1 %v3464_v0  ;;  %1557 = vmatpush3.msra.mxu0 %v2693_v39 }
  0x1c   :  { %1999 = vmatpush3.msra.mxu1 %v2584_v27  ;;  %1964 = vmatmul.mubr.msk.f32.gmra.mxu0 %vm52_vm1, %v38_v40 }
  0x1d   :  { %2000 = vmatprep.subr.mxu1 %v3464_v0  ;;  %1558 = vmatprep.subr.mxu0 %v2703_v41 }
  0x1e   :  { %2001 = vmatpush3.msra.mxu1 %v2591_v28  ;;  %1559 = vmatpush3.msra.mxu0 %v2710_v42 }
  0x1f   :  { %2002 = vmatprep.subr.mxu1 %v3464_v0  ;;  %1966 = vmatprep.mubr.msk.f32.mxu0 %vm52_vm1, %v39_v44 }
  0x20   :  { %2003 = vmatpush3.msra.mxu1 %v2598_v29  ;;  %1560 = vmatprep.subr.mxu0 %v2715_v43 }
  0x21   :  { %2005 = vmatmul.mubr.f32.vlgmr.msra.gmra.mxu1 %v3464_v0  ;;  %2007 = vmatprep.subr.mxu1 %v3464_v0 }
  0x22   :  { %2008 = vmatpush3.msra.mxu1 %v2425_v1  ;;  %2039 = vmatprep.mubr.msk.f32.mxu1 %vm2375_vm0, %v3464_v0 }
  0x23   :  { %2009 = vmatprep.subr.mxu1 %v3464_v0  ;;  %1561 = vmatpush3.msra.mxu0 %v2725_v45 }
  0x24   :  { %2010 = vmatpush3.msra.mxu1 %v2430_v2  ;;  %1967 = vmatmul.mubr.msk.f32.gmra.mxu0 %vm52_vm1, %v40_v46 }
  0x25   :  { %2011 = vmatprep.subr.mxu1 %v3464_v0  ;;  %1562 = vmatprep.subr.mxu0 %v2733_v47 }
  0x26   :  { %2012 = vmatpush3.msra.mxu1 %v2439_v3  ;;  %1563 = vmatpush3.msra.mxu0 %v2739_v48 }
  0x27   :  { %2013 = vmatprep.subr.mxu1 %v3464_v0  ;;  %1969 = vmatprep.mubr.msk.f32.mxu0 %vm52_vm1, %v41_v49 }
  0x28   :  { %2014 = vmatpush3.msra.mxu1 %v2449_v5  ;;  %1564 = vmatprep.subr.mxu0 %v2748_v50 }
  0x29   :  { %2015 = vmatprep.subr.mxu1 %v3464_v0  ;;  %1565 = vmatpush3.msra.mxu0 %v2755_v51 }
  0x2a   :  { %2016 = vmatpush3.msra.mxu1 %v2462_v8  ;;  %1970 = vmatmul.mubr.msk.f32.gmra.mxu0 %vm52_vm1, %v42_v52 }
  0x2b   :  { %2017 = vmatprep.subr.mxu1 %v3464_v0  ;;  %1566 = vmatprep.subr.mxu0 %v2765_v53 }
  0x2c   :  { %2018 = vmatpush3.msra.mxu1 %v2477_v11  ;;  %1567 = vmatpush3.msra.mxu0 %v2771_v54 }
  0x2d   :  { %2019 = vmatprep.subr.mxu1 %v3464_v0  ;;  %376 = vmatprep.mubr.f32.mxu0 %v3464_v0 }
  0x2e   :  { %2020 = vmatpush3.msra.mxu1 %v2496_v14  ;;  %1568 = vmatprep.subr.mxu0 %v2777_v55 }
  0x2f   :  { %2021 = vmatprep.subr.mxu1 %v3464_v0  ;;  %1569 = vmatpush3.msra.mxu0 %v2784_v56 }
  0x30   :  { %2022 = vmatpush3.msra.mxu1 %v2515_v17  ;;  %1570 = vmatprep.subr.mxu0 %v2790_v57 }
  0x31   :  { %2023 = vmatprep.subr.mxu1 %v3464_v0  ;;  %1571 = vmatpush3.msra.mxu0 %v2797_v58 }
  0x32   :  { %2024 = vmatpush3.msra.mxu1 %v2534_v20  ;;  %1592 = vmatprep.subr.mxu0 %v2471_v10 }
  0x33   :  { %2025 = vmatprep.subr.mxu1 %v3464_v0 }
  0x34   :  { %2026 = vmatpush3.msra.mxu1 %v2553_v23 }
  0x35   :  { %2027 = vmatprep.subr.mxu1 %v3464_v0 }
  0x36   :  { %2028 = vmatpush3.msra.mxu1 %v2562_v24 }
  0x37   :  { %2029 = vmatprep.subr.mxu1 %v3464_v0 }
  0x38   :  { %2030 = vmatpush3.msra.mxu1 %v2570_v25 }
  0x39   :  { %2031 = vmatprep.subr.mxu1 %v3464_v0 }
  0x3a   :  { %2032 = vmatpush3.msra.mxu1 %v2577_v26 }
  0x3b   :  { %2033 = vmatprep.subr.mxu1 %v3464_v0 }
  0x3c   :  { %2034 = vmatpush3.msra.mxu1 %v2584_v27 }
  0x3d   :  { %2035 = vmatprep.subr.mxu1 %v3464_v0 }
  0x3e   :  { %2036 = vmatpush3.msra.mxu1 %v2591_v28 }
  0x3f   :  { %2037 = vmatprep.subr.mxu1 %v3464_v0 }
  0x40   :  { %2038 = vmatpush3.msra.mxu1 %v2598_v29 }
  0x41   :  { %2042 = vmatprep.subr.mxu1 %v3464_v0 }
  0xc8   :  { %v2803_v59 = vpop.f32.mrf.mxu0 }
  0xc9   :  { %v149_v52 = vadd.f32 %v2803_v59, %v2808_v60  ;;  %v3468_v59 = vmov 0.0  }
  0xca   :  { %v143_v61 = vpop.f32.mrf.mxu0 }
  0xcb   :  { %v144_v62 = vadd.f32 %v2808_v60, %v143_v61 }
  0xdc   :  { %v2877_v9 = vpop.f32.mrf.mxu0 }
  0xde   :  { %v2879_v38 = vpop.f32.mrf.mxu0 }
  0xe1   :  { %v267_v63 = vpop.f32.mrf.mxu1 }
  0xe2   :  { %v271_v4 = vadd.f32 %v267_v63, %v144_v62 }
  0xe3   :  { %v2006_v6 = vpop.f32.mrf.mxu1 }
  0xe4   :  { %2289 = vtanh.f32 %v271_v4  ;;  %v2881_v40 = vpop.f32.mrf.mxu0  ;;  %v2894_v4 = vld [vmem:[%s3460_s5] ss:$0 sm:$0xff] }
  0xe5   :  { %3466 = vst [vmem:[#allocation3_spill] sm:$0xff] %v2881_v40 }
  0xe6   :  { %v2883_v44 = vpop.f32.mrf.mxu0 }
  0xea   :  { %v2885_v46 = vpop.f32.mrf.mxu0 }
  0xeb   :  { %3467 = vst [vmem:[#allocation4_spill] sm:$0xff] %v2885_v46 }
  0xec   :  { %v2887_v49 = vpop.f32.mrf.mxu0 }
  0xf1   :  { %v2290_v7 = vpop.eup %2289 }
  0xf2   :  { %377 = vmatmul.mubr.f32.vlgmr.msra.gmra.mxu0 %v2290_v7  ;;  %2040 = vmatmul.mubr.f32.vlgmr.msra.gmra.mxu1 %v2290_v7 }
  0xf3   :  { %2043 = vmatpush3.msra.mxu1 %v2425_v1  ;;  %1593 = vmatpush3.msra.mxu0 %v2483_v12 }
  0xf4   :  { %2044 = vmatprep.subr.mxu1 %v3464_v0  ;;  %1594 = vmatprep.subr.mxu0 %v2490_v13 }
  0xf5   :  { %2045 = vmatpush3.msra.mxu1 %v2430_v2  ;;  %1595 = vmatpush3.msra.mxu0 %v2502_v15 }
  0xf6   :  { %2046 = vmatprep.subr.mxu1 %v3464_v0  ;;  %1596 = vmatprep.subr.mxu0 %v2509_v16 }
  0xf7   :  { %2047 = vmatpush3.msra.mxu1 %v2439_v3  ;;  %1597 = vmatpush3.msra.mxu0 %v2521_v18 }
  0xf8   :  { %2048 = vmatprep.subr.mxu1 %v3464_v0  ;;  %1598 = vmatprep.subr.mxu0 %v2528_v19 }
  0xf9   :  { %2049 = vmatpush3.msra.mxu1 %v2449_v5  ;;  %1599 = vmatpush3.msra.mxu0 %v2540_v21 }
  0xfa   :  { %2050 = vmatprep.subr.mxu1 %v3464_v0  ;;  %1600 = vmatprep.subr.mxu0 %v2547_v22 }
  0xfb   :  { %2051 = vmatpush3.msra.mxu1 %v2462_v8  ;;  %1601 = vmatpush3.msra.mxu0 %v2642_v30 }
  0xfc   :  { %2052 = vmatprep.subr.mxu1 %v3464_v0  ;;  %1602 = vmatprep.subr.mxu0 %v2647_v31 }
  0xfd   :  { %2053 = vmatpush3.msra.mxu1 %v2477_v11  ;;  %1603 = vmatpush3.msra.mxu0 %v2654_v32 }
  0xfe   :  { %2054 = vmatprep.subr.mxu1 %v3464_v0  ;;  %1604 = vmatprep.subr.mxu0 %v2659_v33 }
  0xff   :  { %2055 = vmatpush3.msra.mxu1 %v2496_v14  ;;  %1605 = vmatpush3.msra.mxu0 %v2664_v34 }
 0x100   :  { %2056 = vmatprep.subr.mxu1 %v3464_v0  ;;  %1606 = vmatprep.subr.mxu0 %v2670_v35 }
 0x101   :  { %2057 = vmatpush3.msra.mxu1 %v2515_v17  ;;  %1607 = vmatpush3.msra.mxu0 %v2678_v36 }
 0x102   :  { %2058 = vmatprep.subr.mxu1 %v3464_v0  ;;  %1608 = vmatprep.subr.mxu0 %v2684_v37 }
 0x103   :  { %2059 = vmatpush3.msra.mxu1 %v2534_v20  ;;  %1609 = vmatpush3.msra.mxu0 %v2693_v39 }
 0x104   :  { %2060 = vmatprep.subr.mxu1 %v3464_v0  ;;  %1610 = vmatprep.subr.mxu0 %v2703_v41 }
 0x105   :  { %2061 = vmatpush3.msra.mxu1 %v2553_v23  ;;  %1611 = vmatpush3.msra.mxu0 %v2710_v42 }
 0x106   :  { %2062 = vmatprep.subr.mxu1 %v3464_v0  ;;  %1612 = vmatprep.subr.mxu0 %v2715_v43 }
 0x107   :  { %2063 = vmatpush3.msra.mxu1 %v2562_v24  ;;  %1613 = vmatpush3.msra.mxu0 %v2725_v45 }
 0x108   :  { %2064 = vmatprep.subr.mxu1 %v3464_v0  ;;  %1614 = vmatprep.subr.mxu0 %v2733_v47 }
 0x109   :  { %2065 = vmatpush3.msra.mxu1 %v2570_v25  ;;  %1615 = vmatpush3.msra.mxu0 %v2739_v48 }
 0x10a   :  { %2066 = vmatprep.subr.mxu1 %v3464_v0  ;;  %1616 = vmatprep.subr.mxu0 %v2748_v50 }
 0x10b   :  { %2067 = vmatpush3.msra.mxu1 %v2577_v26  ;;  %1617 = vmatpush3.msra.mxu0 %v2755_v51 }
 0x10c   :  { %2068 = vmatprep.subr.mxu1 %v3464_v0  ;;  %1618 = vmatprep.subr.mxu0 %v2765_v53 }
 0x10d   :  { %2069 = vmatpush3.msra.mxu1 %v2584_v27  ;;  %2074 = vmatprep.mubr.msk.f32.mxu1 %vm2375_vm0, %v3464_v0 }
 0x10e   :  { %2070 = vmatprep.subr.mxu1 %v3464_v0  ;;  %1619 = vmatpush3.msra.mxu0 %v2771_v54 }
 0x10f   :  { %2071 = vmatpush3.msra.mxu1 %v2591_v28  ;;  %1620 = vmatprep.subr.mxu0 %v2777_v55 }
 0x110   :  { %2072 = vmatprep.subr.mxu1 %v3464_v0  ;;  %1621 = vmatpush3.msra.mxu0 %v2784_v56 }
 0x111   :  { %2073 = vmatpush3.msra.mxu1 %v2598_v29  ;;  %1622 = vmatprep.subr.mxu0 %v2790_v57 }
 0x112   :  { %1623 = vmatpush3.msra.mxu0 %v2797_v58  ;;  %2077 = vmatprep.subr.mxu1 %v3464_v0 }
 0x113   :  { %1644 = vmatprep.subr.mxu0 %v2471_v10 }
 0x1b2   :  { %v1572_v61 = vpop.f32.mrf.mxu0  ;;  %v449_v62 = vpop.f32.mrf.mxu1 }
 0x1b3   :  { %v453_v63 = vadd.f32 %v449_v62, %v149_v52 }
 0x1b4   :  { %v1573_v6 = vpop.f32.mrf.mxu0  ;;  %v2041_v7 = vpop.f32.mrf.mxu1 }
 0x1b5   :  { %2291 = vtanh.f32 %v453_v63  ;;  %v1574_v0 = vadd.f32 %v1573_v6, %v1572_v61 }
 0x1b7   :  { %v379_v40 = vadd.f32 %v1574_v0, %v2894_v4  ;;  %v154_v0 = vadd.f32 %v2808_v60, %v2879_v38 }
 0x1b9   :  { %2293 = vtanh.f32 %v379_v40 }
 0x1c2   :  { %v2292_v46 = vpop.eup %2291 }
 0x1c3   :  { %2075 = vmatmul.mubr.f32.vlgmr.msra.gmra.mxu1 %v2292_v46 }
 0x1c4   :  { %2078 = vmatpush3.msra.mxu1 %v2425_v1  ;;  %2109 = vmatprep.mubr.msk.f32.mxu1 %vm2375_vm0, %v3468_v59 }
 0x1c5   :  { %2079 = vmatprep.subr.mxu1 %v3468_v59 }
 0x1c6   :  { %v2294_v52 = vpop.eup %2293  ;;  %2080 = vmatpush3.msra.mxu1 %v2430_v2 }
 0x1c7   :  { %519 = vmatprep.mubr.f32.mxu0 %v2294_v52  ;;  %2081 = vmatprep.subr.mxu1 %v3468_v59 }
 0x1c8   :  { %520 = vmatmul.mubr.f32.vlgmr.msra.gmra.mxu0 %v2292_v46  ;;  %2082 = vmatpush3.msra.mxu1 %v2439_v3 }
 0x1c9   :  { %2083 = vmatprep.subr.mxu1 %v3468_v59  ;;  %1645 = vmatpush3.msra.mxu0 %v2483_v12 }
 0x1ca   :  { %2084 = vmatpush3.msra.mxu1 %v2449_v5  ;;  %1646 = vmatprep.subr.mxu0 %v2490_v13 }
 0x1cb   :  { %2085 = vmatprep.subr.mxu1 %v3468_v59  ;;  %1647 = vmatpush3.msra.mxu0 %v2502_v15 }
 0x1cc   :  { %2086 = vmatpush3.msra.mxu1 %v2462_v8  ;;  %1648 = vmatprep.subr.mxu0 %v2509_v16 }
 0x1cd   :  { %2087 = vmatprep.subr.mxu1 %v3468_v59  ;;  %1649 = vmatpush3.msra.mxu0 %v2521_v18 }
 0x1ce   :  { %2088 = vmatpush3.msra.mxu1 %v2477_v11  ;;  %1650 = vmatprep.subr.mxu0 %v2528_v19 }
 0x1cf   :  { %2089 = vmatprep.subr.mxu1 %v3468_v59  ;;  %1651 = vmatpush3.msra.mxu0 %v2540_v21 }
 0x1d0   :  { %2090 = vmatpush3.msra.mxu1 %v2496_v14  ;;  %1652 = vmatprep.subr.mxu0 %v2547_v22 }
 0x1d1   :  { %2091 = vmatprep.subr.mxu1 %v3468_v59  ;;  %1653 = vmatpush3.msra.mxu0 %v2642_v30 }
 0x1d2   :  { %2092 = vmatpush3.msra.mxu1 %v2515_v17  ;;  %1654 = vmatprep.subr.mxu0 %v2647_v31 }
 0x1d3   :  { %2093 = vmatprep.subr.mxu1 %v3468_v59  ;;  %1655 = vmatpush3.msra.mxu0 %v2654_v32 }
 0x1d4   :  { %2094 = vmatpush3.msra.mxu1 %v2534_v20  ;;  %1656 = vmatprep.subr.mxu0 %v2659_v33 }
 0x1d5   :  { %2095 = vmatprep.subr.mxu1 %v3468_v59  ;;  %1657 = vmatpush3.msra.mxu0 %v2664_v34 }
 0x1d6   :  { %2096 = vmatpush3.msra.mxu1 %v2553_v23  ;;  %1658 = vmatprep.subr.mxu0 %v2670_v35 }
 0x1d7   :  { %2097 = vmatprep.subr.mxu1 %v3468_v59  ;;  %1659 = vmatpush3.msra.mxu0 %v2678_v36 }
 0x1d8   :  { %2098 = vmatpush3.msra.mxu1 %v2562_v24  ;;  %1660 = vmatprep.subr.mxu0 %v2684_v37 }
 0x1d9   :  { %2099 = vmatprep.subr.mxu1 %v3468_v59  ;;  %1661 = vmatpush3.msra.mxu0 %v2693_v39 }
 0x1da   :  { %2100 = vmatpush3.msra.mxu1 %v2570_v25  ;;  %1662 = vmatprep.subr.mxu0 %v2703_v41 }
 0x1db   :  { %2101 = vmatprep.subr.mxu1 %v3468_v59  ;;  %1663 = vmatpush3.msra.mxu0 %v2710_v42 }
 0x1dc   :  { %2102 = vmatpush3.msra.mxu1 %v2577_v26  ;;  %1664 = vmatprep.subr.mxu0 %v2715_v43 }
 0x1dd   :  { %2103 = vmatprep.subr.mxu1 %v3468_v59  ;;  %1665 = vmatpush3.msra.mxu0 %v2725_v45 }
 0x1de   :  { %2104 = vmatpush3.msra.mxu1 %v2584_v27  ;;  %1666 = vmatprep.subr.mxu0 %v2733_v47 }
 0x1df   :  { %2105 = vmatprep.subr.mxu1 %v3468_v59  ;;  %1667 = vmatpush3.msra.mxu0 %v2739_v48 }
 0x1e0   :  { %2106 = vmatpush3.msra.mxu1 %v2591_v28  ;;  %1668 = vmatprep.subr.mxu0 %v2748_v50 }
 0x1e1   :  { %2107 = vmatprep.subr.mxu1 %v3468_v59  ;;  %1669 = vmatpush3.msra.mxu0 %v2755_v51 }
 0x1e2   :  { %2108 = vmatpush3.msra.mxu1 %v2598_v29  ;;  %1670 = vmatprep.subr.mxu0 %v2765_v53 }
 0x1e3   :  { %1671 = vmatpush3.msra.mxu0 %v2771_v54  ;;  %2112 = vmatprep.subr.mxu1 %v3468_v59 }
 0x1e4   :  { %1672 = vmatprep.subr.mxu0 %v2777_v55 }
 0x1e5   :  { %1673 = vmatpush3.msra.mxu0 %v2784_v56 }
 0x1e6   :  { %1674 = vmatprep.subr.mxu0 %v2790_v57 }
 0x1e7   :  { %1675 = vmatpush3.msra.mxu0 %v2797_v58 }
 0x1e8   :  { %1696 = vmatprep.subr.mxu0 %v2471_v10 }
 0x283   :  { %v592_v40 = vpop.f32.mrf.mxu1 }
 0x284   :  { %v596_v46 = vadd.f32 %v592_v40, %v154_v0  ;;  %v159_v0 = vadd.f32 %v2877_v9, %v2808_v60 }
 0x285   :  { %v2076_v61 = vpop.f32.mrf.mxu1 }
 0x286   :  { %2295 = vtanh.f32 %v596_v46 }
 0x288   :  { %v1624_v62 = vpop.f32.mrf.mxu0 }
 0x28a   :  { %v1625_v63 = vpop.f32.mrf.mxu0 }
 0x28b   :  { %v1626_v6 = vadd.f32 %v1625_v63, %v1624_v62 }
 0x28d   :  { %v522_v7 = vadd.f32 %v1626_v6, %v2894_v4 }
 0x28f   :  { %2297 = vtanh.f32 %v522_v7 }
 0x293   :  { %v2296_v52 = vpop.eup %2295 }
 0x294   :  { %2110 = vmatmul.mubr.f32.vlgmr.msra.gmra.mxu1 %v2296_v52 }
 0x295   :  { %2113 = vmatpush3.msra.mxu1 %v2425_v1  ;;  %2144 = vmatprep.mubr.msk.f32.mxu1 %vm2375_vm0, %v3468_v59 }
 0x296   :  { %2114 = vmatprep.subr.mxu1 %v3468_v59 }
 0x297   :  { %2115 = vmatpush3.msra.mxu1 %v2430_v2 }
 0x298   :  { %2116 = vmatprep.subr.mxu1 %v3468_v59 }
 0x299   :  { %2117 = vmatpush3.msra.mxu1 %v2439_v3 }
 0x29a   :  { %2118 = vmatprep.subr.mxu1 %v3468_v59 }
 0x29b   :  { %2119 = vmatpush3.msra.mxu1 %v2449_v5 }
 0x29c   :  { %v2298_v38 = vpop.eup %2297  ;;  %2120 = vmatprep.subr.mxu1 %v3468_v59 }
 0x29d   :  { %662 = vmatprep.mubr.f32.mxu0 %v2298_v38  ;;  %2121 = vmatpush3.msra.mxu1 %v2462_v8 }
 0x29e   :  { %663 = vmatmul.mubr.f32.vlgmr.msra.gmra.mxu0 %v2296_v52  ;;  %2122 = vmatprep.subr.mxu1 %v3468_v59 }
 0x29f   :  { %2123 = vmatpush3.msra.mxu1 %v2477_v11  ;;  %1697 = vmatpush3.msra.mxu0 %v2483_v12 }
 0x2a0   :  { %2124 = vmatprep.subr.mxu1 %v3468_v59  ;;  %1698 = vmatprep.subr.mxu0 %v2490_v13 }
 0x2a1   :  { %2125 = vmatpush3.msra.mxu1 %v2496_v14  ;;  %1699 = vmatpush3.msra.mxu0 %v2502_v15 }
 0x2a2   :  { %2126 = vmatprep.subr.mxu1 %v3468_v59  ;;  %1700 = vmatprep.subr.mxu0 %v2509_v16 }
 0x2a3   :  { %2127 = vmatpush3.msra.mxu1 %v2515_v17  ;;  %1701 = vmatpush3.msra.mxu0 %v2521_v18 }
 0x2a4   :  { %2128 = vmatprep.subr.mxu1 %v3468_v59  ;;  %1702 = vmatprep.subr.mxu0 %v2528_v19 }
 0x2a5   :  { %2129 = vmatpush3.msra.mxu1 %v2534_v20  ;;  %1703 = vmatpush3.msra.mxu0 %v2540_v21 }
 0x2a6   :  { %2130 = vmatprep.subr.mxu1 %v3468_v59  ;;  %1704 = vmatprep.subr.mxu0 %v2547_v22 }
 0x2a7   :  { %2131 = vmatpush3.msra.mxu1 %v2553_v23  ;;  %1705 = vmatpush3.msra.mxu0 %v2642_v30 }
 0x2a8   :  { %2132 = vmatprep.subr.mxu1 %v3468_v59  ;;  %1706 = vmatprep.subr.mxu0 %v2647_v31 }
 0x2a9   :  { %2133 = vmatpush3.msra.mxu1 %v2562_v24  ;;  %1707 = vmatpush3.msra.mxu0 %v2654_v32 }
 0x2aa   :  { %2134 = vmatprep.subr.mxu1 %v3468_v59  ;;  %1708 = vmatprep.subr.mxu0 %v2659_v33 }
 0x2ab   :  { %2135 = vmatpush3.msra.mxu1 %v2570_v25  ;;  %1709 = vmatpush3.msra.mxu0 %v2664_v34 }
 0x2ac   :  { %2136 = vmatprep.subr.mxu1 %v3468_v59  ;;  %1710 = vmatprep.subr.mxu0 %v2670_v35 }
 0x2ad   :  { %2137 = vmatpush3.msra.mxu1 %v2577_v26  ;;  %1711 = vmatpush3.msra.mxu0 %v2678_v36 }
 0x2ae   :  { %2138 = vmatprep.subr.mxu1 %v3468_v59  ;;  %1712 = vmatprep.subr.mxu0 %v2684_v37 }
 0x2af   :  { %2139 = vmatpush3.msra.mxu1 %v2584_v27  ;;  %1713 = vmatpush3.msra.mxu0 %v2693_v39 }
 0x2b0   :  { %2140 = vmatprep.subr.mxu1 %v3468_v59  ;;  %1714 = vmatprep.subr.mxu0 %v2703_v41 }
 0x2b1   :  { %2141 = vmatpush3.msra.mxu1 %v2591_v28  ;;  %1715 = vmatpush3.msra.mxu0 %v2710_v42 }
 0x2b2   :  { %2142 = vmatprep.subr.mxu1 %v3468_v59  ;;  %1716 = vmatprep.subr.mxu0 %v2715_v43 }
 0x2b3   :  { %2143 = vmatpush3.msra.mxu1 %v2598_v29  ;;  %1717 = vmatpush3.msra.mxu0 %v2725_v45 }
 0x2b4   :  { %1718 = vmatprep.subr.mxu0 %v2733_v47  ;;  %2147 = vmatprep.subr.mxu1 %v3468_v59 }
 0x2b5   :  { %1719 = vmatpush3.msra.mxu0 %v2739_v48 }
 0x2b6   :  { %1720 = vmatprep.subr.mxu0 %v2748_v50 }
 0x2b7   :  { %1721 = vmatpush3.msra.mxu0 %v2755_v51 }
 0x2b8   :  { %1722 = vmatprep.subr.mxu0 %v2765_v53 }
 0x2b9   :  { %1723 = vmatpush3.msra.mxu0 %v2771_v54 }
 0x2ba   :  { %1724 = vmatprep.subr.mxu0 %v2777_v55 }
 0x2bb   :  { %1725 = vmatpush3.msra.mxu0 %v2784_v56 }
 0x2bc   :  { %1726 = vmatprep.subr.mxu0 %v2790_v57 }
 0x2bd   :  { %1727 = vmatpush3.msra.mxu0 %v2797_v58 }
 0x2be   :  { %1748 = vmatprep.subr.mxu0 %v2471_v10 }
 0x354   :  { %v735_v40 = vpop.f32.mrf.mxu1 }
 0x355   :  { %v739_v46 = vadd.f32 %v735_v40, %v159_v0 }
 0x356   :  { %v2111_v61 = vpop.f32.mrf.mxu1 }
 0x357   :  { %2299 = vtanh.f32 %v739_v46 }
 0x35e   :  { %v1676_v62 = vpop.f32.mrf.mxu0 }
 0x360   :  { %v1677_v63 = vpop.f32.mrf.mxu0 }
 0x361   :  { %v1678_v6 = vadd.f32 %v1677_v63, %v1676_v62 }
 0x363   :  { %v665_v7 = vadd.f32 %v1678_v6, %v2894_v4  ;;  %v2346_v6 = vld [vmem:[%s3455_s3] sm:$0xff] }
 0x364   :  { %v2300_v52 = vpop.eup %2299 }
 0x365   :  { %2301 = vtanh.f32 %v665_v7  ;;  %2145 = vmatmul.mubr.f32.vlgmr.msra.gmra.mxu1 %v2300_v52  ;;  %v2347_v7 = vld [vmem:[%s3458_s4 + $0xe0] sm:$0xff] }
 0x366   :  { %2148 = vmatpush3.msra.mxu1 %v2425_v1  ;;  %2179 = vmatprep.mubr.msk.f32.mxu1 %vm2375_vm0, %v3468_v59 }
 0x367   :  { %2149 = vmatprep.subr.mxu1 %v3468_v59 }
 0x368   :  { %2150 = vmatpush3.msra.mxu1 %v2430_v2  ;;  %v164_v2 = vadd.f32 %v2808_v60, %v2883_v44  ;;  %v3111_v44 = vld [vmem:[%s3455_s3 + $0x70] sm:$0xff] }
 0x369   :  { %2151 = vmatprep.subr.mxu1 %v3468_v59 }
 0x36a   :  { %2152 = vmatpush3.msra.mxu1 %v2439_v3 }
 0x36b   :  { %2153 = vmatprep.subr.mxu1 %v3468_v59 }
 0x36c   :  { %2154 = vmatpush3.msra.mxu1 %v2449_v5 }
 0x36d   :  { %2155 = vmatprep.subr.mxu1 %v3468_v59 }
 0x36e   :  { %2156 = vmatpush3.msra.mxu1 %v2462_v8 }
 0x36f   :  { %2157 = vmatprep.subr.mxu1 %v3468_v59 }
 0x370   :  { %2158 = vmatpush3.msra.mxu1 %v2477_v11 }
 0x371   :  { %2159 = vmatprep.subr.mxu1 %v3468_v59 }
 0x372   :  { %v2302_v9 = vpop.eup %2301  ;;  %2160 = vmatpush3.msra.mxu1 %v2496_v14 }
 0x373   :  { %805 = vmatprep.mubr.f32.mxu0 %v2302_v9  ;;  %2161 = vmatprep.subr.mxu1 %v3468_v59  ;;  %v2349_v9 = vld [vmem:[%s3458_s4 + $0xd8] sm:$0xff] }
 0x374   :  { %806 = vmatmul.mubr.f32.vlgmr.msra.gmra.mxu0 %v2300_v52  ;;  %2162 = vmatpush3.msra.mxu1 %v2515_v17  ;;  %v2348_v52 = vld [vmem:[%s3458_s4 + $0x60] sm:$0xff] }
 0x375   :  { %2163 = vmatprep.subr.mxu1 %v3468_v59  ;;  %1749 = vmatpush3.msra.mxu0 %v2483_v12 }
 0x376   :  { %2164 = vmatpush3.msra.mxu1 %v2534_v20  ;;  %1750 = vmatprep.subr.mxu0 %v2490_v13 }
 0x377   :  { %2165 = vmatprep.subr.mxu1 %v3468_v59  ;;  %1751 = vmatpush3.msra.mxu0 %v2502_v15 }
 0x378   :  { %2166 = vmatpush3.msra.mxu1 %v2553_v23  ;;  %1752 = vmatprep.subr.mxu0 %v2509_v16 }
 0x379   :  { %2167 = vmatprep.subr.mxu1 %v3468_v59  ;;  %1753 = vmatpush3.msra.mxu0 %v2521_v18 }
 0x37a   :  { %2168 = vmatpush3.msra.mxu1 %v2562_v24  ;;  %1754 = vmatprep.subr.mxu0 %v2528_v19 }
 0x37b   :  { %2169 = vmatprep.subr.mxu1 %v3468_v59  ;;  %1755 = vmatpush3.msra.mxu0 %v2540_v21 }
 0x37c   :  { %2170 = vmatpush3.msra.mxu1 %v2570_v25  ;;  %1756 = vmatprep.subr.mxu0 %v2547_v22 }
 0x37d   :  { %2171 = vmatprep.subr.mxu1 %v3468_v59  ;;  %1757 = vmatpush3.msra.mxu0 %v2642_v30 }
 0x37e   :  { %2172 = vmatpush3.msra.mxu1 %v2577_v26  ;;  %1758 = vmatprep.subr.mxu0 %v2647_v31 }
 0x37f   :  { %2173 = vmatprep.subr.mxu1 %v3468_v59  ;;  %1759 = vmatpush3.msra.mxu0 %v2654_v32 }
 0x380   :  { %2174 = vmatpush3.msra.mxu1 %v2584_v27  ;;  %1760 = vmatprep.subr.mxu0 %v2659_v33 }
 0x381   :  { %2175 = vmatprep.subr.mxu1 %v3468_v59  ;;  %1761 = vmatpush3.msra.mxu0 %v2664_v34 }
 0x382   :  { %2176 = vmatpush3.msra.mxu1 %v2591_v28  ;;  %1762 = vmatprep.subr.mxu0 %v2670_v35 }
 0x383   :  { %2177 = vmatprep.subr.mxu1 %v3468_v59  ;;  %1763 = vmatpush3.msra.mxu0 %v2678_v36 }
 0x384   :  { %2178 = vmatpush3.msra.mxu1 %v2598_v29  ;;  %1764 = vmatprep.subr.mxu0 %v2684_v37 }
 0x385   :  { %1765 = vmatpush3.msra.mxu0 %v2693_v39  ;;  %2182 = vmatprep.subr.mxu1 %v3468_v59 }
 0x386   :  { %1766 = vmatprep.subr.mxu0 %v2703_v41 }
 0x387   :  { %1767 = vmatpush3.msra.mxu0 %v2710_v42 }
 0x388   :  { %1768 = vmatprep.subr.mxu0 %v2715_v43 }
 0x389   :  { %1769 = vmatpush3.msra.mxu0 %v2725_v45 }
 0x38a   :  { %1770 = vmatprep.subr.mxu0 %v2733_v47 }
 0x38b   :  { %1771 = vmatpush3.msra.mxu0 %v2739_v48 }
 0x38c   :  { %1772 = vmatprep.subr.mxu0 %v2748_v50 }
 0x38d   :  { %1773 = vmatpush3.msra.mxu0 %v2755_v51 }
 0x38e   :  { %1774 = vmatprep.subr.mxu0 %v2765_v53 }
 0x38f   :  { %1775 = vmatpush3.msra.mxu0 %v2771_v54 }
 0x390   :  { %1776 = vmatprep.subr.mxu0 %v2777_v55 }
 0x391   :  { %1777 = vmatpush3.msra.mxu0 %v2784_v56 }
 0x392   :  { %1778 = vmatprep.subr.mxu0 %v2790_v57 }
 0x393   :  { %1779 = vmatpush3.msra.mxu0 %v2797_v58 }
 0x394   :  { %1800 = vmatprep.subr.mxu0 %v2471_v10 }
 0x425   :  { %v878_v38 = vpop.f32.mrf.mxu1 }
 0x426   :  { %v882_v0 = vadd.f32 %v878_v38, %v164_v2  ;;  %v2350_v2 = vld [vmem:[%s3458_s4 + $0x58] sm:$0xff]  ;;  %v2351_v38 = vld [vmem:[%s3458_s4 + $0xd0] sm:$0xff] }
 0x427   :  { %v2146_v40 = vpop.f32.mrf.mxu1 }
 0x428   :  { %2303 = vtanh.f32 %v882_v0  ;;  %v2352_v0 = vld [vmem:[%s3458_s4 + $0x50] sm:$0xff]  ;;  %v2353_v40 = vld [vmem:[%s3458_s4 + $0xc8] sm:$0xff] }
 0x434   :  { %v1728_v46 = vpop.f32.mrf.mxu0 }
 0x435   :  { %v2304_v61 = vpop.eup %2303 }
 0x436   :  { %v1729_v62 = vpop.f32.mrf.mxu0  ;;  %2180 = vmatmul.mubr.f32.vlgmr.msra.gmra.mxu1 %v2304_v61 }
 0x437   :  { %v1730_v63 = vadd.f32 %v1729_v62, %v1728_v46  ;;  %2183 = vmatpush3.msra.mxu1 %v2425_v1  ;;  %2214 = vmatprep.mubr.msk.f32.mxu1 %vm2375_vm0, %v3468_v59  ;;  %v2354_v46 = vld [vmem:[%s3458_s4 + $0x48] sm:$0xff]  ;;  %v2356_v62 = vld [vmem:[%s3458_s4 + $0x40] sm:$0xff] }
 0x438   :  { %2184 = vmatprep.subr.mxu1 %v3468_v59 }
 0x439   :  { %v808_v10 = vadd.f32 %v1730_v63, %v2894_v4  ;;  %2185 = vmatpush3.msra.mxu1 %v3111_v44  ;;  %v2357_v63 = vld [vmem:[%s3458_s4 + $0xb8] sm:$0xff] }
 0x43a   :  { %2186 = vmatprep.subr.mxu1 %v3468_v59 }
 0x43b   :  { %2305 = vtanh.f32 %v808_v10  ;;  %2187 = vmatpush3.msra.mxu1 %v2439_v3  ;;  %v3177_v3 = vld [vmem:[%s3458_s4 + $0xf8] sm:$0xff] }
 0x43c   :  { %2188 = vmatprep.subr.mxu1 %v3468_v59  ;;  %v2358_v10 = vld [vmem:[%s3458_s4 + $0x38] sm:$0xff] }
 0x43d   :  { %2189 = vmatpush3.msra.mxu1 %v2449_v5  ;;  %v3469_v5 = vld [vmem:[#allocation3_spill] sm:$0xff] }
 0x43e   :  { %2190 = vmatprep.subr.mxu1 %v3468_v59 }
 0x43f   :  { %2191 = vmatpush3.msra.mxu1 %v2462_v8  ;;  %v169_v8 = vadd.f32 %v3469_v5, %v2808_v60  ;;  %v2368_v5 = vld [vmem:[%s3458_s4 + $0x10] sm:$0xff] }
 0x440   :  { %2192 = vmatprep.subr.mxu1 %v3468_v59 }
 0x441   :  { %2193 = vmatpush3.msra.mxu1 %v2477_v11 }
 0x442   :  { %2194 = vmatprep.subr.mxu1 %v3468_v59 }
 0x443   :  { %2195 = vmatpush3.msra.mxu1 %v2496_v14 }
 0x444   :  { %2196 = vmatprep.subr.mxu1 %v3468_v59 }
 0x445   :  { %2197 = vmatpush3.msra.mxu1 %v2515_v17 }
 0x446   :  { %2198 = vmatprep.subr.mxu1 %v3468_v59 }
 0x447   :  { %2199 = vmatpush3.msra.mxu1 %v2534_v20  ;;  %v2329_v20 = vld [vmem:[%s3455_s3 + $0x60] sm:$0xff] }
 0x448   :  { %v2306_v1 = vpop.eup %2305  ;;  %2200 = vmatprep.subr.mxu1 %v3468_v59 }
 0x449   :  { %948 = vmatprep.mubr.f32.mxu0 %v2306_v1  ;;  %2201 = vmatpush3.msra.mxu1 %v2553_v23  ;;  %v2331_v23 = vld [vmem:[%s3455_s3 + $0x50] sm:$0xff]  ;;  %v2366_v1 = vld [vmem:[%s3458_s4 + $0x18] sm:$0xff] }
 0x44a   :  { %949 = vmatmul.mubr.f32.vlgmr.msra.gmra.mxu0 %v2304_v61  ;;  %2202 = vmatprep.subr.mxu1 %v3468_v59  ;;  %v2355_v61 = vld [vmem:[%s3458_s4 + $0xc0] sm:$0xff] }
 0x44b   :  { %2203 = vmatpush3.msra.mxu1 %v2562_v24  ;;  %1801 = vmatpush3.msra.mxu0 %v2483_v12  ;;  %v2332_v24 = vld [vmem:[%s3455_s3 + $0x48] sm:$0xff] }
 0x44c   :  { %2204 = vmatprep.subr.mxu1 %v3468_v59  ;;  %1802 = vmatprep.subr.mxu0 %v2490_v13 }
 0x44d   :  { %2205 = vmatpush3.msra.mxu1 %v2570_v25  ;;  %1803 = vmatpush3.msra.mxu0 %v2502_v15  ;;  %v2327_v15 = vld [vmem:[%s3455_s3 + $0x78] sm:$0xff]  ;;  %v2333_v25 = vld [vmem:[%s3455_s3 + $0x40] sm:$0xff] }
 0x44e   :  { %2206 = vmatprep.subr.mxu1 %v3468_v59  ;;  %1804 = vmatprep.subr.mxu0 %v2509_v16 }
 0x44f   :  { %2207 = vmatpush3.msra.mxu1 %v2577_v26  ;;  %1805 = vmatpush3.msra.mxu0 %v2521_v18  ;;  %v2328_v18 = vld [vmem:[%s3455_s3 + $0x68] sm:$0xff]  ;;  %v2334_v26 = vld [vmem:[%s3455_s3 + $0x38] sm:$0xff] }
 0x450   :  { %2208 = vmatprep.subr.mxu1 %v3468_v59  ;;  %1806 = vmatprep.subr.mxu0 %v2528_v19 }
 0x451   :  { %2209 = vmatpush3.msra.mxu1 %v2584_v27  ;;  %1807 = vmatpush3.msra.mxu0 %v2540_v21  ;;  %v2335_v27 = vld [vmem:[%s3455_s3 + $0x30] sm:$0xff] }
 0x452   :  { %2210 = vmatprep.subr.mxu1 %v3468_v59  ;;  %1808 = vmatprep.subr.mxu0 %v2547_v22  ;;  %v2330_v22 = vld [vmem:[%s3455_s3 + $0x58] sm:$0xff] }
 0x453   :  { %2211 = vmatpush3.msra.mxu1 %v2591_v28  ;;  %1809 = vmatpush3.msra.mxu0 %v2642_v30  ;;  %v2336_v28 = vld [vmem:[%s3455_s3 + $0x28] sm:$0xff]  ;;  %v2337_v30 = vld [vmem:[%s3455_s3 + $0x20] sm:$0xff] }
 0x454   :  { %2212 = vmatprep.subr.mxu1 %v3468_v59  ;;  %1810 = vmatprep.subr.mxu0 %v2647_v31  ;;  %v2338_v31 = vld [vmem:[%s3455_s3 + $0x18] sm:$0xff] }
 0x455   :  { %2213 = vmatpush3.msra.mxu1 %v2598_v29  ;;  %1811 = vmatpush3.msra.mxu0 %v2654_v32  ;;  %v3238_v32 = vld [vmem:[%s3458_s4 + $0x78] sm:$0xff] }
 0x456   :  { %1812 = vmatprep.subr.mxu0 %v2659_v33  ;;  %2217 = vmatprep.subr.mxu1 %v3468_v59  ;;  %v2340_v33 = vld [vmem:[%s3455_s3 + $0x10] sm:$0xff] }
 0x457   :  { %1813 = vmatpush3.msra.mxu0 %v2664_v34  ;;  %v3247_v34 = vld [vmem:[%s3458_s4 + $0xf0] sm:$0xff] }
 0x458   :  { %1814 = vmatprep.subr.mxu0 %v2670_v35  ;;  %v3254_v35 = vld [vmem:[%s3458_s4 + $0x70] sm:$0xff] }
 0x459   :  { %1815 = vmatpush3.msra.mxu0 %v2678_v36  ;;  %v2343_v36 = vld [vmem:[%s3455_s3 + $0x8] sm:$0xff] }
 0x45a   :  { %1816 = vmatprep.subr.mxu0 %v2684_v37  ;;  %v3263_v37 = vld [vmem:[%s3458_s4 + $0xe8] sm:$0xff] }
 0x45b   :  { %1817 = vmatpush3.msra.mxu0 %v2693_v39  ;;  %v3270_v39 = vld [vmem:[%s3458_s4 + $0x68] sm:$0xff] }
 0x45c   :  { %1818 = vmatprep.subr.mxu0 %v2703_v41 }
 0x45d   :  { %1819 = vmatpush3.msra.mxu0 %v2710_v42 }
 0x45e   :  { %1820 = vmatprep.subr.mxu0 %v2715_v43 }
 0x45f   :  { %1821 = vmatpush3.msra.mxu0 %v2725_v45 }
 0x460   :  { %1822 = vmatprep.subr.mxu0 %v2733_v47 }
 0x461   :  { %1823 = vmatpush3.msra.mxu0 %v2739_v48 }
 0x462   :  { %1824 = vmatprep.subr.mxu0 %v2748_v50 }
 0x463   :  { %1825 = vmatpush3.msra.mxu0 %v2755_v51 }
 0x464   :  { %1826 = vmatprep.subr.mxu0 %v2765_v53 }
 0x465   :  { %1827 = vmatpush3.msra.mxu0 %v2771_v54 }
 0x466   :  { %1828 = vmatprep.subr.mxu0 %v2777_v55 }
 0x467   :  { %1829 = vmatpush3.msra.mxu0 %v2784_v56 }
 0x468   :  { %1830 = vmatprep.subr.mxu0 %v2790_v57 }
 0x469   :  { %1831 = vmatpush3.msra.mxu0 %v2797_v58 }
 0x46a   :  { %1852 = vmatprep.subr.mxu0 %v3177_v3 }
 0x4f6   :  { %v1021_v11 = vpop.f32.mrf.mxu1 }
 0x4f7   :  { %v1025_v12 = vadd.f32 %v1021_v11, %v169_v8  ;;  %v2369_v8 = vld [vmem:[%s3458_s4 + $0x88] sm:$0xff] }
 0x4f8   :  { %v2181_v13 = vpop.f32.mrf.mxu1  ;;  %v2370_v11 = vld [vmem:[%s3458_s4 + $0x8] sm:$0xff] }
 0x4f9   :  { %2307 = vtanh.f32 %v1025_v12  ;;  %v2371_v12 = vld [vmem:[%s3458_s4 + $0x80] sm:$0xff] }
 0x4fa   :  { %v2372_v13 = vld [vmem:[%s3458_s4] sm:$0xff] }
 0x506   :  { %v2308_v14 = vpop.eup %2307 }
 0x507   :  { %2215 = vmatmul.mubr.f32.vlgmr.msra.gmra.mxu1 %v2308_v14 }
 0x508   :  { %2218 = vmatpush3.msra.mxu1 %v2327_v15  ;;  %2249 = vmatprep.mubr.msk.f32.mxu1 %vm2375_vm0, %v3468_v59  ;;  %v1403_v15 = vld [vmem:[%s3461_s6 + $0x70] sm:$0xff] }
 0x509   :  { %2219 = vmatprep.subr.mxu1 %v3468_v59 }
 0x50a   :  { %v1780_v16 = vpop.f32.mrf.mxu0  ;;  %2220 = vmatpush3.msra.mxu1 %v3111_v44  ;;  %v2365_v44 = vld [vmem:[%s3458_s4 + $0x98] sm:$0xff] }
 0x50b   :  { %2221 = vmatprep.subr.mxu1 %v3468_v59 }
 0x50c   :  { %v1781_v17 = vpop.f32.mrf.mxu0  ;;  %2222 = vmatpush3.msra.mxu1 %v2328_v18  ;;  %v1400_v18 = vld [vmem:[%s3461_s6 + $0x58] sm:$0xff] }
 0x50d   :  { %v1782_v19 = vadd.f32 %v1781_v17, %v1780_v16  ;;  %2223 = vmatprep.subr.mxu1 %v3468_v59  ;;  %v1402_v16 = vld [vmem:[%s3461_s6 + $0x68] sm:$0xff]  ;;  %v1401_v17 = vld [vmem:[%s3461_s6 + $0x60] sm:$0xff] }
 0x50e   :  { %2224 = vmatpush3.msra.mxu1 %v2329_v20 }
 0x50f   :  { %v951_v21 = vadd.f32 %v1782_v19, %v2894_v4  ;;  %2225 = vmatprep.subr.mxu1 %v3468_v59 }
 0x510   :  { %2226 = vmatpush3.msra.mxu1 %v2330_v22  ;;  %v2373_v22 = vld [vmem:[%s3459_s2] ss:$0 sm:$0xff] }
 0x511   :  { %2309 = vtanh.f32 %v951_v21  ;;  %2227 = vmatprep.subr.mxu1 %v3468_v59 }
 0x512   :  { %2228 = vmatpush3.msra.mxu1 %v2331_v23  ;;  %v3470_v23 = vld [vmem:[#allocation4_spill] sm:$0xff] }
 0x513   :  { %2229 = vmatprep.subr.mxu1 %v3468_v59 }
 0x514   :  { %2230 = vmatpush3.msra.mxu1 %v2332_v24  ;;  %v179_v24 = vadd.f32 %v2373_v22, %v3470_v23 }
 0x515   :  { %2231 = vmatprep.subr.mxu1 %v3468_v59 }
 0x516   :  { %2232 = vmatpush3.msra.mxu1 %v2333_v25 }
 0x517   :  { %2233 = vmatprep.subr.mxu1 %v3468_v59 }
 0x518   :  { %2234 = vmatpush3.msra.mxu1 %v2334_v26 }
 0x519   :  { %2235 = vmatprep.subr.mxu1 %v3468_v59 }
 0x51a   :  { %2236 = vmatpush3.msra.mxu1 %v2335_v27 }
 0x51b   :  { %2237 = vmatprep.subr.mxu1 %v3468_v59 }
 0x51c   :  { %2238 = vmatpush3.msra.mxu1 %v2336_v28 }
 0x51d   :  { %2239 = vmatprep.subr.mxu1 %v3468_v59 }
 0x51e   :  { %v2310_v29 = vpop.eup %2309  ;;  %2240 = vmatpush3.msra.mxu1 %v2337_v30 }
 0x51f   :  { %1091 = vmatprep.mubr.f32.mxu0 %v2310_v29  ;;  %2241 = vmatprep.subr.mxu1 %v3468_v59 }
 0x520   :  { %1092 = vmatmul.mubr.f32.vlgmr.msra.gmra.mxu0 %v2308_v14  ;;  %2242 = vmatpush3.msra.mxu1 %v2338_v31  ;;  %v1404_v14 = vld [vmem:[%s3461_s6 + $0x78] sm:$0xff]  ;;  %v1399_v31 = vld [vmem:[%s3461_s6 + $0x50] sm:$0xff] }
 0x521   :  { %2243 = vmatprep.subr.mxu1 %v3468_v59  ;;  %1853 = vmatpush3.msra.mxu0 %v3238_v32 }
 0x522   :  { %2244 = vmatpush3.msra.mxu1 %v2340_v33  ;;  %1854 = vmatprep.subr.mxu0 %v3247_v34  ;;  %v1397_v33 = vld [vmem:[%s3461_s6 + $0x40] sm:$0xff] }
 0x523   :  { %2245 = vmatprep.subr.mxu1 %v3468_v59  ;;  %1855 = vmatpush3.msra.mxu0 %v3254_v35 }
 0x524   :  { %2246 = vmatpush3.msra.mxu1 %v2343_v36  ;;  %1856 = vmatprep.subr.mxu0 %v3263_v37  ;;  %v1394_v36 = vld [vmem:[%s3461_s6 + $0x28] sm:$0xff] }
 0x525   :  { %2247 = vmatprep.subr.mxu1 %v3468_v59  ;;  %1857 = vmatpush3.msra.mxu0 %v3270_v39 }
 0x526   :  { %2248 = vmatpush3.msra.mxu1 %v2346_v6  ;;  %1858 = vmatprep.subr.mxu0 %v2347_v7  ;;  %v1391_v6 = vld [vmem:[%s3461_s6 + $0x10] sm:$0xff] }
 0x527   :  { %1859 = vmatpush3.msra.mxu0 %v2348_v52  ;;  %2252 = vmatprep.subr.mxu1 %v3468_v59 }
 0x528   :  { %1860 = vmatprep.subr.mxu0 %v2349_v9 }
 0x529   :  { %1861 = vmatpush3.msra.mxu0 %v2350_v2 }
 0x52a   :  { %1862 = vmatprep.subr.mxu0 %v2351_v38 }
 0x52b   :  { %1863 = vmatpush3.msra.mxu0 %v2352_v0 }
 0x52c   :  { %1864 = vmatprep.subr.mxu0 %v2353_v40 }
 0x52d   :  { %1865 = vmatpush3.msra.mxu0 %v2354_v46 }
 0x52e   :  { %1866 = vmatprep.subr.mxu0 %v2355_v61 }
 0x52f   :  { %1867 = vmatpush3.msra.mxu0 %v2356_v62 }
 0x530   :  { %1868 = vmatprep.subr.mxu0 %v2357_v63 }
 0x531   :  { %1869 = vmatpush3.msra.mxu0 %v2358_v10 }
 0x532   :  { %1870 = vmatprep.subr.mxu0 %v2703_v41  ;;  %v174_v41 = vadd.f32 %v2808_v60, %v2887_v49  ;;  %v2363_v60 = vld [vmem:[%s3458_s4 + $0xa0] sm:$0xff] }
 0x533   :  { %1871 = vmatpush3.msra.mxu0 %v2710_v42  ;;  %v2364_v49 = vld [vmem:[%s3458_s4 + $0x20] sm:$0xff] }
 0x534   :  { %1872 = vmatprep.subr.mxu0 %v2715_v43 }
 0x535   :  { %1873 = vmatpush3.msra.mxu0 %v2725_v45 }
 0x536   :  { %1874 = vmatprep.subr.mxu0 %v2733_v47 }
 0x537   :  { %1875 = vmatpush3.msra.mxu0 %v2739_v48 }
 0x538   :  { %1876 = vmatprep.subr.mxu0 %v2748_v50 }
 0x539   :  { %1877 = vmatpush3.msra.mxu0 %v2755_v51 }
 0x53a   :  { %1878 = vmatprep.subr.mxu0 %v2765_v53 }
 0x53b   :  { %1879 = vmatpush3.msra.mxu0 %v2771_v54 }
 0x53c   :  { %1880 = vmatprep.subr.mxu0 %v2777_v55  ;;  %v2359_v55 = vld [vmem:[%s3458_s4 + $0xb0] sm:$0xff] }
 0x53d   :  { %1881 = vmatpush3.msra.mxu0 %v2784_v56  ;;  %v2360_v56 = vld [vmem:[%s3458_s4 + $0x30] sm:$0xff] }
 0x53e   :  { %1882 = vmatprep.subr.mxu0 %v2790_v57  ;;  %v2361_v57 = vld [vmem:[%s3458_s4 + $0xa8] sm:$0xff] }
 0x53f   :  { %1883 = vmatpush3.msra.mxu0 %v2797_v58  ;;  %v2362_v58 = vld [vmem:[%s3458_s4 + $0x28] sm:$0xff] }
 0x540   :  { %1904 = vmatprep.subr.mxu0 %v3177_v3  ;;  %v2367_v3 = vld [vmem:[%s3458_s4 + $0x90] sm:$0xff] }
 0x5c7   :  { %v1164_v42 = vpop.f32.mrf.mxu1 }
 0x5c8   :  { %v1168_v43 = vadd.f32 %v1164_v42, %v174_v41 }
 0x5c9   :  { %v2216_v45 = vpop.f32.mrf.mxu1 }
 0x5ca   :  { %2311 = vtanh.f32 %v1168_v43 }
 0x5d7   :  { %v2312_v47 = vpop.eup %2311 }
 0x5d8   :  { %2250 = vmatmul.mubr.f32.vlgmr.msra.gmra.mxu1 %v2312_v47 }
 0x5d9   :  { %2284 = vmatprep.mubr.msk.f32.mxu1 %vm2375_vm0, %v3468_v59  ;;  %2253 = vmatpush3.msra.mxu1 %v1404_v14 }
 0x5da   :  { %2254 = vmatprep.subr.mxu1 %v3468_v59 }
 0x5db   :  { %2255 = vmatpush3.msra.mxu1 %v1403_v15 }
 0x5dc   :  { %2256 = vmatprep.subr.mxu1 %v3468_v59 }
 0x5dd   :  { %2257 = vmatpush3.msra.mxu1 %v1402_v16 }
 0x5de   :  { %2258 = vmatprep.subr.mxu1 %v3468_v59 }
 0x5df   :  { %2259 = vmatpush3.msra.mxu1 %v1401_v17 }
 0x5e0   :  { %v1832_v48 = vpop.f32.mrf.mxu0  ;;  %2260 = vmatprep.subr.mxu1 %v3468_v59 }
 0x5e1   :  { %2261 = vmatpush3.msra.mxu1 %v1400_v18 }
 0x5e2   :  { %v1833_v50 = vpop.f32.mrf.mxu0  ;;  %2262 = vmatprep.subr.mxu1 %v3468_v59 }
 0x5e3   :  { %v1834_v51 = vadd.f32 %v1833_v50, %v1832_v48  ;;  %2263 = vmatpush3.msra.mxu1 %v1399_v31 }
 0x5e4   :  { %2264 = vmatprep.subr.mxu1 %v3468_v59 }
 0x5e5   :  { %v1094_v53 = vadd.f32 %v1834_v51, %v2894_v4 }
 0x5e7   :  { %2313 = vtanh.f32 %v1094_v53 }
 0x5f4   :  { %v2314_v54 = vpop.eup %2313 }
 0x5f5   :  { %1234 = vmatprep.mubr.f32.mxu0 %v2314_v54 }
 0x5f6   :  { %1235 = vmatmul.mubr.f32.vlgmr.msra.gmra.mxu0 %v2312_v47 }
 0x5f7   :  { %1905 = vmatpush3.msra.mxu0 %v3238_v32  ;;  %v1398_v32 = vld [vmem:[%s3461_s6 + $0x48] sm:$0xff] }
 0x5f8   :  { %1906 = vmatprep.subr.mxu0 %v3247_v34  ;;  %2265 = vmatpush3.msra.mxu1 %v1398_v32  ;;  %v1396_v34 = vld [vmem:[%s3461_s6 + $0x38] sm:$0xff] }
 0x5f9   :  { %1907 = vmatpush3.msra.mxu0 %v3254_v35  ;;  %2266 = vmatprep.subr.mxu1 %v3468_v59  ;;  %v1395_v35 = vld [vmem:[%s3461_s6 + $0x30] sm:$0xff] }
 0x5fa   :  { %1908 = vmatprep.subr.mxu0 %v3263_v37  ;;  %2267 = vmatpush3.msra.mxu1 %v1397_v33  ;;  %v1393_v37 = vld [vmem:[%s3461_s6 + $0x20] sm:$0xff] }
 0x5fb   :  { %1909 = vmatpush3.msra.mxu0 %v3270_v39  ;;  %2268 = vmatprep.subr.mxu1 %v3468_v59  ;;  %v1392_v39 = vld [vmem:[%s3461_s6 + $0x18] sm:$0xff] }
 0x5fc   :  { %1910 = vmatprep.subr.mxu0 %v2347_v7  ;;  %2269 = vmatpush3.msra.mxu1 %v1396_v34  ;;  %v1390_v7 = vld [vmem:[%s3461_s6 + $0x8] sm:$0xff] }
 0x5fd   :  { %1911 = vmatpush3.msra.mxu0 %v2348_v52  ;;  %2270 = vmatprep.subr.mxu1 %v3468_v59  ;;  %v1389_v52 = vld [vmem:[%s3461_s6] sm:$0xff] }
 0x5fe   :  { %1912 = vmatprep.subr.mxu0 %v2349_v9  ;;  %2271 = vmatpush3.msra.mxu1 %v1395_v35 }
 0x5ff   :  { %1913 = vmatpush3.msra.mxu0 %v2350_v2  ;;  %2272 = vmatprep.subr.mxu1 %v3468_v59 }
 0x600   :  { %1914 = vmatprep.subr.mxu0 %v2351_v38  ;;  %2273 = vmatpush3.msra.mxu1 %v1394_v36 }
 0x601   :  { %1915 = vmatpush3.msra.mxu0 %v2352_v0  ;;  %2274 = vmatprep.subr.mxu1 %v3468_v59 }
 0x602   :  { %1916 = vmatprep.subr.mxu0 %v2353_v40  ;;  %2275 = vmatpush3.msra.mxu1 %v1393_v37 }
 0x603   :  { %1917 = vmatpush3.msra.mxu0 %v2354_v46  ;;  %2276 = vmatprep.subr.mxu1 %v3468_v59  ;;  %v1482_v46 = vlaneseq }
 0x604   :  { %1918 = vmatprep.subr.mxu0 %v2355_v61  ;;  %2277 = vmatpush3.msra.mxu1 %v1392_v39 }
 0x605   :  { %1919 = vmatpush3.msra.mxu0 %v2356_v62  ;;  %2278 = vmatprep.subr.mxu1 %v3468_v59  ;;  %v1483_v61 = vand.u32 127, %v1482_v46  ;;  %v1512_v62 = vld [vmem:[%s3462_s7] ss:$0 sm:$0xff] }
 0x606   :  { %1920 = vmatprep.subr.mxu0 %v2357_v63  ;;  %2279 = vmatpush3.msra.mxu1 %v1391_v6 }
 0x607   :  { %1921 = vmatpush3.msra.mxu0 %v2358_v10  ;;  %2280 = vmatprep.subr.mxu1 %v3468_v59  ;;  %vm1484_vm2 = vcmp.lt.s32.totalorder %v1483_v61, 8 }
 0x608   :  { %1922 = vmatprep.subr.mxu0 %v2359_v55  ;;  %2281 = vmatpush3.msra.mxu1 %v1390_v7 }
 0x609   :  { %1923 = vmatpush3.msra.mxu0 %v2360_v56  ;;  %2282 = vmatprep.subr.mxu1 %v3468_v59 }
 0x60a   :  { %1924 = vmatprep.subr.mxu0 %v2361_v57  ;;  %2283 = vmatpush3.msra.mxu1 %v1389_v52 }
 0x60b   :  { %1925 = vmatpush3.msra.mxu0 %v2362_v58 }
 0x60c   :  { %1926 = vmatprep.subr.mxu0 %v2363_v60 }
 0x60d   :  { %1927 = vmatpush3.msra.mxu0 %v2364_v49 }
 0x60e   :  { %1928 = vmatprep.subr.mxu0 %v2365_v44 }
 0x60f   :  { %1929 = vmatpush3.msra.mxu0 %v2366_v1 }
 0x610   :  { %1930 = vmatprep.subr.mxu0 %v2367_v3 }
 0x611   :  { %1931 = vmatpush3.msra.mxu0 %v2368_v5 }
 0x612   :  { %1932 = vmatprep.subr.mxu0 %v2369_v8 }
 0x613   :  { %1933 = vmatpush3.msra.mxu0 %v2370_v11 }
 0x614   :  { %1934 = vmatprep.subr.mxu0 %v2371_v12 }
 0x615   :  { %1935 = vmatpush3.msra.mxu0 %v2372_v13 }
 0x698   :  { %v1307_v19 = vpop.f32.mrf.mxu1 }
 0x699   :  { %v1311_v27 = vadd.f32 %v1307_v19, %v179_v24 }
 0x69a   :  { %v2251_v20 = vpop.f32.mrf.mxu1 }
 0x6b6   :  { %v1884_v21 = vpop.f32.mrf.mxu0 }
 0x6b8   :  { %v1885_v25 = vpop.f32.mrf.mxu0 }
 0x6b9   :  { %v1886_v26 = vadd.f32 %v1885_v25, %v1884_v21 }
 0x6bb   :  { %v1237_v28 = vadd.f32 %v1886_v26, %v2894_v4 }
 0x6bd   :  { %2315 = vtanh.f32 %v1237_v28 }
 0x6be   :  { %2317 = vtanh.f32 %v1311_v27 }
 0x6ca   :  { %v2316_v29 = vpop.eup %2315 }
 0x6cb   :  { %v2318_v30 = vpop.eup %2317  ;;  %1377 = vmatprep.mubr.f32.mxu0 %v2316_v29 }
 0x6cc   :  { %1378 = vmatmul.mubr.f32.vlgmr.msra.gmra.mxu0 %v2318_v30 }
 0x78c   :  { %v1936_v9 = vpop.f32.mrf.mxu0 }
 0x78e   :  { %v1937_v2 = vpop.f32.mrf.mxu0 }
 0x78f   :  { %v1938_v38 = vadd.f32 %v1937_v2, %v1936_v9 }
 0x791   :  { %v1380_v0 = vadd.f32 %v1938_v38, %v2894_v4 }
 0x793   :  { %2319 = vtanh.f32 %v1380_v0 }
 0x7a0   :  { %v2320_v40 = vpop.eup %2319 }
 0x7a1   :  { %2285 = vmatmul.mubr.f32.vlgmr.msra.gmra.mxu1 %v2320_v40 }
 0x861   :  { %v1478_v63 = vpop.f32.mrf.mxu1 }
 0x862   :  { %v1479_v10 = vadd.f32 %v1512_v62, %v1478_v63 }
 0x863   :  { %v2286_v41 = vpop.f32.mrf.mxu1 }
 0x864   :  { %v1485_v59 = vsel %vm1484_vm2, %v1479_v10, -1e+30 }
 0x865   :  { %1486 = vmax.xlane.f32.xlu0 %v1485_v59 }
 0x8ee   :  { %v1487_v42 = vpop.xlane.xlu0 %1486 }
 0x8ef   :  { %v1488_v43 = vsub.f32 %v1485_v59, %v1487_v42 }
 0x8f1   :  { %v1489_v45 = vmul.f32 1.442695, %v1488_v43 }
 0x8f3   :  { %2321 = vpow2.f32 %v1489_v45 }
 0x900   :  { %v2322_v4 = vpop.eup %2321 }
 0x901   :  { %1491 = vadd.xlane.f32.xlu0 %v2322_v4 }
 0x98a   :  { %v1492_v47 = vpop.xlane.xlu0 %1491 }
 0x98b   :  { %2323 = vlog2.f32 %v1492_v47 }
 0x998   :  { %v2324_v48 = vpop.eup %2323 }
 0x999   :  { %v1494_v50 = vmul.f32 0.6931472, %v2324_v48 }
 0x99b   :  { %v1495_v51 = vadd.f32 %v1494_v50, %v1487_v42 }
 0x99d   :  { %v1496_v53 = vsub.f32 %v1485_v59, %v1495_v51 }
 0x99f   :  { %1497 = vst [vmem:[%s3463_s8] sm:$0xff] %v1496_v53 }

</bundles_post_ra>
